<compile_context>
chip_gen: v7x
topology: tpu7x:2x2x1
jax: 0.10.0
libtpu: 0.0.40
codegen_flags: <defaults>
</compile_context>

<pallas_src>
import math

import jax
import jax.numpy as jnp
import numpy as np
from jax.experimental import pallas as pl
from jax.experimental.pallas import tpu as pltpu

BN_EPS = 1e-5


def _round_up(x, m):
    return ((x + m - 1) // m) * m


def _pad_to(x, shape):
    return jnp.pad(x, [(0, t - s) for s, t in zip(x.shape, shape)])


def gcn_kernel(mask_ref, x0_ref, a_ref, w_ref, scale_ref, shift_ref,
               p_ref, wm_ref, bm_ref, out_ref, x_cur, x_new, acc):
    """Grid = (layer, node row tile, reduction tile).

    mask_ref  : SMEM [ni*nk] int32   per-tile occupancy of A (scalar prefetch)
    x0_ref    : [N_pad, H_pad] f32   AtomEncoder output (resident, read once)
    a_ref     : [TM, TK] bf16        streamed A_norm tile
    w_ref     : [1, H_pad, H_pad] bf16   GCNConv weight of current layer
    scale_ref : [1, 1, H_pad] f32    folded BN scale  (gamma * rsqrt(var+eps))
    shift_ref : [1, 1, H_pad] f32    folded bias+BN shift
    p_ref     : [G_pad, N_pad] f32   mean-pool matrix
    wm_ref    : [H_pad, C_pad] f32   final Linear weight
    bm_ref    : [1, C_pad] f32       final Linear bias
    out_ref   : [G_pad, C_pad] f32
    x_cur/x_new : [N_pad, H_pad] f32 resident node features (layer in / out)
    acc       : [TM, H_pad] f32      row-tile accumulator of A @ x
    """
    l = pl.program_id(0)
    i = pl.program_id(1)
    k = pl.program_id(2)
    nl = pl.num_programs(0)
    ni = pl.num_programs(1)
    nk = pl.num_programs(2)
    tm, tk = a_ref.shape

    # One-time load of the AtomEncoder embeddings into the resident buffer.
    @pl.when((l == 0) & (i == 0) & (k == 0))
    def _():
        x_cur[...] = x0_ref[...]

    # Layer boundary: promote previous layer's output to current input.
    @pl.when((l > 0) & (i == 0) & (k == 0))
    def _():
        x_cur[...] = x_new[...]

    # Start of this row tile's reduction over k.
    @pl.when(k == 0)
    def _():
        acc[...] = jnp.zeros_like(acc)

    # acc += A[i, k] @ x[k]  (bf16 MXU inputs, f32 accumulation).  All-zero
    # adjacency tiles (off-diagonal blocks of a batched graph) are skipped.
    @pl.when(mask_ref[i * nk + k] != 0)
    def _():
        ks = pl.ds(pl.multiple_of(k * tk, tk), tk)
        xk = x_cur[ks, :].astype(jnp.bfloat16)
        acc[...] += jnp.dot(a_ref[...], xk, preferred_element_type=jnp.float32)

    # End of reduction: feature transform, fused bias+BN, relu, residual.
    @pl.when(k == nk - 1)
    def _():
        h = jnp.dot(acc[...].astype(jnp.bfloat16), w_ref[0],
                    preferred_element_type=jnp.float32)
        h = h * scale_ref[0] + shift_ref[0]
        h = jnp.maximum(h, 0.0)
        rs = pl.ds(pl.multiple_of(i * tm, tm), tm)
        x_new[rs, :] = x_cur[rs, :] + h
        # TODO(synk): F.dropout is identity in eval mode; training-mode
        # dropout (random mask) is not implemented here.

    # Very last grid step: global mean pool + final Linear (lane-dense out).
    @pl.when((l == nl - 1) & (i == ni - 1) & (k == nk - 1))
    def _():
        pooled = jnp.dot(p_ref[...], x_new[...],
                         preferred_element_type=jnp.float32)
        out_ref[...] = (jnp.dot(pooled, wm_ref[...],
                                preferred_element_type=jnp.float32)
                        + bm_ref[...])


def gcnv2_net_forward(x_emb, a_norm, W, b, gamma, beta, rmean, rvar, P, Wm, bm,
                      *, tm=128, tk=128):
    N, H = x_emb.shape
    L = W.shape[0]
    G = P.shape[0]
    C = Wm.shape[1]

    H_pad = _round_up(H, 128)
    C_pad = _round_up(C, 128)
    G_pad = _round_up(G, 8)
    N_pad = _round_up(N, math.lcm(tm, tk))
    ni, nk = N_pad // tm, N_pad // tk

    # Fold GCNConv bias + BatchNorm (eval, running stats) into scale/shift.
    inv_std = 1.0 / jnp.sqrt(rvar + BN_EPS)
    scale = gamma * inv_std
    shift = (b - rmean) * scale + beta

    a_f32 = _pad_to(a_norm.astype(jnp.float32), (N_pad, N_pad))
    # Per-tile occupancy mask: dense batched-graph adjacency is block-diagonal,
    # so most off-diagonal tiles are all-zero and their MXU work can be skipped.
    tile_mask = (jnp.abs(a_f32).reshape(ni, tm, nk, tk).sum(axis=(1, 3)) > 0)
    tile_mask = tile_mask.astype(jnp.int32).reshape(-1)

    x0_p = _pad_to(x_emb.astype(jnp.float32), (N_pad, H_pad))
    a_p = a_f32.astype(jnp.bfloat16)                       # bf16 HBM stream
    W_p = _pad_to(W.astype(jnp.float32), (L, H_pad, H_pad)).astype(jnp.bfloat16)
    scale_p = _pad_to(scale.astype(jnp.float32), (L, 1, H_pad))
    shift_p = _pad_to(shift.astype(jnp.float32), (L, 1, H_pad))
    P_p = _pad_to(P.astype(jnp.float32), (G_pad, N_pad))
    Wm_p = _pad_to(Wm.astype(jnp.float32), (H_pad, C_pad))
    bm_p = _pad_to(bm.astype(jnp.float32), (1, C_pad))

    # Explicit VMEM budget: double-buffered A tiles + resident x buffers +
    # accumulator + per-layer params (+ headroom).
    vmem_bytes = (2 * tm * tk * 2            # A tiles, bf16, double-buffered
                  + 3 * N_pad * H_pad * 4    # x0 + x_cur + x_new
                  + tm * H_pad * 4           # accumulator
                  + 2 * H_pad * H_pad * 2    # W[l], double-buffered
                  + G_pad * N_pad * 4        # P
                  + H_pad * C_pad * 4        # Wm
                  + 8 * H_pad * 4            # scale/shift
                  + G_pad * C_pad * 4)       # out
    vmem_limit = int(min(max(2 * vmem_bytes, 32 * (1 << 20)), 64 * (1 << 20)))

    grid_spec = pltpu.PrefetchScalarGridSpec(
        num_scalar_prefetch=1,
        grid=(L, ni, nk),
        in_specs=[
            pl.BlockSpec((N_pad, H_pad), lambda l, i, k, m: (0, 0)),       # x0
            pl.BlockSpec((tm, tk), lambda l, i, k, m: (i, k)),             # A
            pl.BlockSpec((1, H_pad, H_pad), lambda l, i, k, m: (l, 0, 0)),  # W
            pl.BlockSpec((1, 1, H_pad), lambda l, i, k, m: (l, 0, 0)),     # scale
            pl.BlockSpec((1, 1, H_pad), lambda l, i, k, m: (l, 0, 0)),     # shift
            pl.BlockSpec((G_pad, N_pad), lambda l, i, k, m: (0, 0)),       # P
            pl.BlockSpec((H_pad, C_pad), lambda l, i, k, m: (0, 0)),       # Wm
            pl.BlockSpec((1, C_pad), lambda l, i, k, m: (0, 0)),           # bm
        ],
        out_specs=pl.BlockSpec((G_pad, C_pad), lambda l, i, k, m: (0, 0)),
        scratch_shapes=[
            pltpu.VMEM((N_pad, H_pad), jnp.float32),   # x_cur
            pltpu.VMEM((N_pad, H_pad), jnp.float32),   # x_new
            pltpu.VMEM((tm, H_pad), jnp.float32),      # row-tile accumulator
        ],
    )

    out_pad = pl.pallas_call(
        gcn_kernel,
        out_shape=jax.ShapeDtypeStruct((G_pad, C_pad), jnp.float32),
        grid_spec=grid_spec,
        compiler_params=pltpu.CompilerParams(
            # Layer and reduction axes are true sequential deps; the row-tile
            # axis must also stay sequential because x_cur/x_new are scratch
            # buffers shared across row tiles (layer-boundary swap).
            # TODO(synk): megacore (v7x) row parallelism would need per-core
            # x partitions or per-layer pallas_calls.
            dimension_semantics=("arbitrary", "arbitrary", "arbitrary"),
            vmem_limit_bytes=vmem_limit),
    )(tile_mask, x0_p, a_p, W_p, scale_p, shift_p, P_p, Wm_p, bm_p)

    return out_pad[:G, :C]


# ---------------------------------------------------------------------------
# Glue: AtomEncoder, adjacency normalization, pooling matrix (plain JAX)
# ---------------------------------------------------------------------------

def atom_encoder(x_int, emb_tables):
    # x_int: [N, F_atom] integer atom features; emb_tables: [F_atom, V, H]
    # AtomEncoder sums the per-feature embeddings.
    out = jnp.zeros((x_int.shape[0], emb_tables.shape[-1]), jnp.float32)
    for k in range(x_int.shape[1]):
        out = out + emb_tables[k][x_int[:, k]]
    return out


def gcn_norm_dense(edge_index, num_nodes):
    # A[i, j] = 1 for edge j -> i ; add self loops ; symmetric normalization.
    src, dst = edge_index[0], edge_index[1]
    A = jnp.zeros((num_nodes, num_nodes), jnp.float32).at[dst, src].add(1.0)
    A = A + jnp.eye(num_nodes, dtype=jnp.float32)
    deg = A.sum(axis=1)
    d_inv_sqrt = jnp.where(deg > 0, jax.lax.rsqrt(deg), 0.0)
    return d_inv_sqrt[:, None] * A * d_inv_sqrt[None, :]


def mean_pool_matrix(batch, num_graphs):
    onehot = (batch[None, :] == jnp.arange(num_graphs)[:, None]).astype(jnp.float32)
    counts = jnp.maximum(onehot.sum(axis=1, keepdims=True), 1.0)
    return onehot / counts


# ---------------------------------------------------------------------------
# Pure-JAX reference (f32, unfused) for a correctness sanity check
# ---------------------------------------------------------------------------

def reference_forward(x_emb, a_norm, W, b, gamma, beta, rmean, rvar, P, Wm, bm):
    x = x_emb
    for l in range(W.shape[0]):
        h = a_norm @ x @ W[l] + b[l]
        h = gamma[l] * (h - rmean[l]) / jnp.sqrt(rvar[l] + BN_EPS) + beta[l]
        h = jnp.maximum(h, 0.0)
        x = x + h
    return P @ x @ Wm + bm


if __name__ == "__main__":
    # Small, TPU-friendly synthetic sizes.  Two disjoint graphs laid out so the
    # dense adjacency is block-diagonal across 128-tiles (exercises both the
    # multi-tile accumulation path and the zero-tile skip path).
    H = 32            # hid_channels
    C = 8             # out_channels
    L = 3             # num_layers
    F_ATOM = 3        # synthetic atom-feature columns for AtomEncoder
    VOCAB = 10
    N0, N1 = 128, 72  # nodes per graph
    E0, E1 = 300, 160 # edges per graph
    N = N0 + N1
    G = 2

    key = jax.random.PRNGKey(0)
    keys = jax.random.split(key, 14)

    # Inputs
    x_int = jax.random.randint(keys[0], (N, F_ATOM), 0, VOCAB)
    e0 = jax.random.randint(keys[1], (2, E0), 0, N0)
    e1 = jax.random.randint(keys[2], (2, E1), N0, N)
    edge_index = jnp.concatenate([e0, e1], axis=1)
    batch = jnp.concatenate([jnp.zeros(N0, jnp.int32), jnp.ones(N1, jnp.int32)])

    # Parameters (deterministic)
    emb_tables = 0.1 * jax.random.normal(keys[3], (F_ATOM, VOCAB, H), jnp.float32)
    W = 0.1 * jax.random.normal(keys[4], (L, H, H), jnp.float32)
    b = 0.1 * jax.random.normal(keys[5], (L, 1, H), jnp.float32)
    gamma = 1.0 + 0.1 * jax.random.normal(keys[6], (L, 1, H), jnp.float32)
    beta = 0.1 * jax.random.normal(keys[7], (L, 1, H), jnp.float32)
    rmean = 0.1 * jax.random.normal(keys[8], (L, 1, H), jnp.float32)
    rvar = 0.5 + jax.random.uniform(keys[9], (L, 1, H), jnp.float32)
    Wm = 0.1 * jax.random.normal(keys[10], (H, C), jnp.float32)
    bm = 0.1 * jax.random.normal(keys[11], (1, C), jnp.float32)

    # Glue
    x_emb = atom_encoder(x_int, emb_tables)            # AtomEncoder
    a_norm = gcn_norm_dense(edge_index, N)             # GCN normalized adjacency
    P = mean_pool_matrix(batch, G)                     # global_mean_pool matrix

    out = gcnv2_net_forward(x_emb, a_norm, W, b, gamma, beta, rmean, rvar,
                            P, Wm, bm, tm=128, tk=128)
    out = jax.block_until_ready(out)

    ref = reference_forward(x_emb, a_norm, W, b, gamma, beta, rmean, rvar,
                            P, Wm, bm)
    # bf16 MXU inputs -> loosened tolerance vs the f32 reference.
    np.testing.assert_allclose(np.asarray(out), np.asarray(ref),
                               rtol=5e-2, atol=2e-2)
    print("KERNEL_OK")
</pallas_src>

<mosaic_0001>
module attributes {stable_mosaic.version = 11 : i64} {
  func.func @gcn_kernel(%arg0: i32, %arg1: i32, %arg2: i32, %arg3: memref<4xi32, #tpu.memory_space<smem>>, %arg4: memref<256x128xf32, #tpu.memory_space<vmem>>, %arg5: memref<128x128xbf16, #tpu.memory_space<vmem>>, %arg6: memref<1x128x128xbf16, #tpu.memory_space<vmem>>, %arg7: memref<1x1x128xf32, #tpu.memory_space<vmem>>, %arg8: memref<1x1x128xf32, #tpu.memory_space<vmem>>, %arg9: memref<8x256xf32, #tpu.memory_space<vmem>>, %arg10: memref<128x128xf32, #tpu.memory_space<vmem>>, %arg11: memref<1x128xf32, #tpu.memory_space<vmem>>, %arg12: memref<8x128xf32, #tpu.memory_space<vmem>>, %arg13: memref<256x128xf32, #tpu.memory_space<vmem>>, %arg14: memref<256x128xf32, #tpu.memory_space<vmem>>, %arg15: memref<128x128xf32, #tpu.memory_space<vmem>>) attributes {dimension_semantics = [#tpu.dimension_semantics<arbitrary>, #tpu.dimension_semantics<arbitrary>, #tpu.dimension_semantics<arbitrary>], iteration_bounds = array<i64: 3, 2, 2>, scalar_prefetch = 1 : i64, scratch_operands = 3 : i64, tpu.core_type = #tpu.core_type<tc>, window_params = [{pipeline_mode = #tpu.pipeline_mode<synchronous>, transform_indices = @transform_0, window_bounds = array<i64: 256, 128>}, {transform_indices = @transform_1, window_bounds = array<i64: 128, 128>}, {transform_indices = @transform_2, window_bounds = array<i64: 1, 128, 128>}, {transform_indices = @transform_3, window_bounds = array<i64: 1, 1, 128>}, {transform_indices = @transform_4, window_bounds = array<i64: 1, 1, 128>}, {pipeline_mode = #tpu.pipeline_mode<synchronous>, transform_indices = @transform_5, window_bounds = array<i64: 8, 256>}, {pipeline_mode = #tpu.pipeline_mode<synchronous>, transform_indices = @transform_6, window_bounds = array<i64: 128, 128>}, {pipeline_mode = #tpu.pipeline_mode<synchronous>, transform_indices = @transform_7, window_bounds = array<i64: 1, 128>}, {pipeline_mode = #tpu.pipeline_mode<synchronous>, transform_indices = @transform_8, window_bounds = array<i64: 8, 128>}]} {
    %c0_i32 = arith.constant 0 : i32
    %0 = arith.cmpi eq, %arg0, %c0_i32 : i32
    %c0_i32_0 = arith.constant 0 : i32
    %1 = arith.cmpi eq, %arg1, %c0_i32_0 : i32
    %2 = arith.andi %0, %1 : i1
    %c0_i32_1 = arith.constant 0 : i32
    %3 = arith.cmpi eq, %arg2, %c0_i32_1 : i32
    %4 = arith.andi %2, %3 : i1
    %5 = arith.extui %4 : i1 to i32
    %c0_i32_2 = arith.constant 0 : i32
    %6 = arith.cmpi ne, %5, %c0_i32_2 : i32
    scf.if %6 {
      %c0 = arith.constant 0 : index
      %c0_16 = arith.constant 0 : index
      %34 = vector.load %arg4[%c0, %c0_16] : memref<256x128xf32, #tpu.memory_space<vmem>>, vector<256x128xf32>
      %c0_17 = arith.constant 0 : index
      %c0_18 = arith.constant 0 : index
      %35 = vector.load %arg13[%c0_17, %c0_18] : memref<256x128xf32, #tpu.memory_space<vmem>>, vector<256x128xf32>
      tpu.vector_store %arg13[%c0_17, %c0_18], %34 {strides = array<i32>} : memref<256x128xf32, #tpu.memory_space<vmem>>, vector<256x128xf32>,
    } else {
    }
    %c0_i32_3 = arith.constant 0 : i32
    %7 = arith.cmpi sgt, %arg0, %c0_i32_3 : i32
    %c0_i32_4 = arith.constant 0 : i32
    %8 = arith.cmpi eq, %arg1, %c0_i32_4 : i32
    %9 = arith.andi %7, %8 : i1
    %c0_i32_5 = arith.constant 0 : i32
    %10 = arith.cmpi eq, %arg2, %c0_i32_5 : i32
    %11 = arith.andi %9, %10 : i1
    %12 = arith.extui %11 : i1 to i32
    %c0_i32_6 = arith.constant 0 : i32
    %13 = arith.cmpi ne, %12, %c0_i32_6 : i32
    scf.if %13 {
      %c0 = arith.constant 0 : index
      %c0_16 = arith.constant 0 : index
      %34 = vector.load %arg14[%c0, %c0_16] : memref<256x128xf32, #tpu.memory_space<vmem>>, vector<256x128xf32>
      %c0_17 = arith.constant 0 : index
      %c0_18 = arith.constant 0 : index
      %35 = vector.load %arg13[%c0_17, %c0_18] : memref<256x128xf32, #tpu.memory_space<vmem>>, vector<256x128xf32>
      tpu.vector_store %arg13[%c0_17, %c0_18], %34 {strides = array<i32>} : memref<256x128xf32, #tpu.memory_space<vmem>>, vector<256x128xf32>,
    } else {
    }
    %c0_i32_7 = arith.constant 0 : i32
    %14 = arith.cmpi eq, %arg2, %c0_i32_7 : i32
    %15 = arith.extui %14 : i1 to i32
    %c0_i32_8 = arith.constant 0 : i32
    %16 = arith.cmpi ne, %15, %c0_i32_8 : i32
    scf.if %16 {
      %cst = arith.constant 0.000000e+00 : f32
      %34 = vector.broadcast %cst : f32 to vector<128x128xf32>
      %c0 = arith.constant 0 : index
      %c0_16 = arith.constant 0 : index
      %35 = vector.load %arg15[%c0, %c0_16] : memref<128x128xf32, #tpu.memory_space<vmem>>, vector<128x128xf32>
      tpu.vector_store %arg15[%c0, %c0_16], %34 {strides = array<i32>} : memref<128x128xf32, #tpu.memory_space<vmem>>, vector<128x128xf32>,
    } else {
    }
    %c2_i32 = arith.constant 2 : i32
    %17 = arith.muli %arg1, %c2_i32 : i32
    %18 = arith.addi %17, %arg2 : i32
    %19 = arith.index_cast %18 : i32 to index
    %20 = memref.load %arg3[%19] : memref<4xi32, #tpu.memory_space<smem>>
    %c0_i32_9 = arith.constant 0 : i32
    %21 = arith.cmpi ne, %20, %c0_i32_9 : i32
    %22 = arith.extui %21 : i1 to i32
    %c0_i32_10 = arith.constant 0 : i32
    %23 = arith.cmpi ne, %22, %c0_i32_10 : i32
    scf.if %23 {
      %c128_i32 = arith.constant 128 : i32
      %34 = arith.muli %arg2, %c128_i32 : i32
      %35 = tpu.assume_multiple %34, 128 : i32
      %36 = arith.index_cast %35 : i32 to index
      %c0 = arith.constant 0 : index
      %37 = vector.load %arg13[%36, %c0] : memref<256x128xf32, #tpu.memory_space<vmem>>, vector<128x128xf32>
      %38 = arith.truncf %37 : vector<128x128xf32> to vector<128x128xbf16>
      %c0_16 = arith.constant 0 : index
      %c0_17 = arith.constant 0 : index
      %39 = vector.load %arg15[%c0_16, %c0_17] : memref<128x128xf32, #tpu.memory_space<vmem>>, vector<128x128xf32>
      %c0_18 = arith.constant 0 : index
      %c0_19 = arith.constant 0 : index
      %40 = vector.load %arg5[%c0_18, %c0_19] : memref<128x128xbf16, #tpu.memory_space<vmem>>, vector<128x128xbf16>
      %cst = arith.constant dense<0.000000e+00> : vector<128x128xf32>
      %41 = tpu.matmul %40, %38, %cst {dimension_numbers = #tpu.dot_dimension_numbers<[1], [0], [0], [1], [0, 0, 1, 1], [], []>} : vector<128x128xbf16>, vector<128x128xbf16>, vector<128x128xf32> -> vector<128x128xf32>
      %42 = arith.addf %39, %41 : vector<128x128xf32>
      %c0_20 = arith.constant 0 : index
      %c0_21 = arith.constant 0 : index
      %43 = vector.load %arg15[%c0_20, %c0_21] : memref<128x128xf32, #tpu.memory_space<vmem>>, vector<128x128xf32>
      tpu.vector_store %arg15[%c0_20, %c0_21], %42 {strides = array<i32>} : memref<128x128xf32, #tpu.memory_space<vmem>>, vector<128x128xf32>,
    } else {
    }
    %c1_i32 = arith.constant 1 : i32
    %24 = arith.cmpi eq, %arg2, %c1_i32 : i32
    %25 = arith.extui %24 : i1 to i32
    %c0_i32_11 = arith.constant 0 : i32
    %26 = arith.cmpi ne, %25, %c0_i32_11 : i32
    scf.if %26 {
      %c0 = arith.constant 0 : index
      %c0_16 = arith.constant 0 : index
      %34 = vector.load %arg15[%c0, %c0_16] : memref<128x128xf32, #tpu.memory_space<vmem>>, vector<128x128xf32>
      %35 = arith.truncf %34 : vector<128x128xf32> to vector<128x128xbf16>
      %c0_17 = arith.constant 0 : index
      %c0_18 = arith.constant 0 : index
      %c0_19 = arith.constant 0 : index
      %36 = vector.load %arg6[%c0_17, %c0_18, %c0_19] : memref<1x128x128xbf16, #tpu.memory_space<vmem>>, vector<1x128x128xbf16>
      %37 = vector.shape_cast %36 : vector<1x128x128xbf16> to vector<128x128xbf16>
      %cst = arith.constant dense<0.000000e+00> : vector<128x128xf32>
      %38 = tpu.matmul %35, %37, %cst {dimension_numbers = #tpu.dot_dimension_numbers<[1], [0], [0], [1], [0, 0, 1, 1], [], []>} : vector<128x128xbf16>, vector<128x128xbf16>, vector<128x128xf32> -> vector<128x128xf32>
      %c0_20 = arith.constant 0 : index
      %c0_21 = arith.constant 0 : index
      %c0_22 = arith.constant 0 : index
      %39 = vector.load %arg7[%c0_20, %c0_21, %c0_22] : memref<1x1x128xf32, #tpu.memory_space<vmem>>, vector<1x1x128xf32>
      %40 = vector.shape_cast %39 : vector<1x1x128xf32> to vector<1x128xf32>
      %41 = vector.broadcast %40 : vector<1x128xf32> to vector<128x128xf32>
      %42 = arith.mulf %38, %41 : vector<128x128xf32>
      %c0_23 = arith.constant 0 : index
      %c0_24 = arith.constant 0 : index
      %c0_25 = arith.constant 0 : index
      %43 = vector.load %arg8[%c0_23, %c0_24, %c0_25] : memref<1x1x128xf32, #tpu.memory_space<vmem>>, vector<1x1x128xf32>
      %44 = vector.shape_cast %43 : vector<1x1x128xf32> to vector<1x128xf32>
      %45 = vector.broadcast %44 : vector<1x128xf32> to vector<128x128xf32>
      %46 = arith.addf %42, %45 : vector<128x128xf32>
      %cst_26 = arith.constant 0.000000e+00 : f32
      %47 = vector.broadcast %cst_26 : f32 to vector<128x128xf32>
      %48 = arith.maximumf %46, %47 : vector<128x128xf32>
      %c128_i32 = arith.constant 128 : i32
      %49 = arith.muli %arg1, %c128_i32 : i32
      %50 = tpu.assume_multiple %49, 128 : i32
      %51 = arith.index_cast %50 : i32 to index
      %c0_27 = arith.constant 0 : index
      %52 = vector.load %arg13[%51, %c0_27] : memref<256x128xf32, #tpu.memory_space<vmem>>, vector<128x128xf32>
      %53 = arith.addf %52, %48 : vector<128x128xf32>
      %54 = arith.index_cast %50 : i32 to index
      %c0_28 = arith.constant 0 : index
      %55 = vector.load %arg14[%54, %c0_28] : memref<256x128xf32, #tpu.memory_space<vmem>>, vector<128x128xf32>
      tpu.vector_store %arg14[%54, %c0_28], %53 {strides = array<i32>} : memref<256x128xf32, #tpu.memory_space<vmem>>, vector<128x128xf32>,
    } else {
    }
    %c2_i32_12 = arith.constant 2 : i32
    %27 = arith.cmpi eq, %arg0, %c2_i32_12 : i32
    %c1_i32_13 = arith.constant 1 : i32
    %28 = arith.cmpi eq, %arg1, %c1_i32_13 : i32
    %29 = arith.andi %27, %28 : i1
    %c1_i32_14 = arith.constant 1 : i32
    %30 = arith.cmpi eq, %arg2, %c1_i32_14 : i32
    %31 = arith.andi %29, %30 : i1
    %32 = arith.extui %31 : i1 to i32
    %c0_i32_15 = arith.constant 0 : i32
    %33 = arith.cmpi ne, %32, %c0_i32_15 : i32
    scf.if %33 {
      %c0 = arith.constant 0 : index
      %c0_16 = arith.constant 0 : index
      %34 = vector.load %arg9[%c0, %c0_16] : memref<8x256xf32, #tpu.memory_space<vmem>>, vector<8x256xf32>
      %c0_17 = arith.constant 0 : index
      %c0_18 = arith.constant 0 : index
      %35 = vector.load %arg14[%c0_17, %c0_18] : memref<256x128xf32, #tpu.memory_space<vmem>>, vector<256x128xf32>
      %cst = arith.constant dense<0.000000e+00> : vector<8x128xf32>
      %36 = tpu.matmul %34, %35, %cst {dimension_numbers = #tpu.dot_dimension_numbers<[1], [0], [0], [1], [0, 0, 1, 1], [], []>} : vector<8x256xf32>, vector<256x128xf32>, vector<8x128xf32> -> vector<8x128xf32>
      %c0_19 = arith.constant 0 : index
      %c0_20 = arith.constant 0 : index
      %37 = vector.load %arg10[%c0_19, %c0_20] : memref<128x128xf32, #tpu.memory_space<vmem>>, vector<128x128xf32>
      %cst_21 = arith.constant dense<0.000000e+00> : vector<8x128xf32>
      %38 = tpu.matmul %36, %37, %cst_21 {dimension_numbers = #tpu.dot_dimension_numbers<[1], [0], [0], [1], [0, 0, 1, 1], [], []>} : vector<8x128xf32>, vector<128x128xf32>, vector<8x128xf32> -> vector<8x128xf32>
      %c0_22 = arith.constant 0 : index
      %c0_23 = arith.constant 0 : index
      %39 = vector.load %arg11[%c0_22, %c0_23] : memref<1x128xf32, #tpu.memory_space<vmem>>, vector<1x128xf32>
      %40 = vector.broadcast %39 : vector<1x128xf32> to vector<8x128xf32>
      %41 = arith.addf %38, %40 : vector<8x128xf32>
      %c0_24 = arith.constant 0 : index
      %c0_25 = arith.constant 0 : index
      %42 = vector.load %arg12[%c0_24, %c0_25] : memref<8x128xf32, #tpu.memory_space<vmem>>, vector<8x128xf32>
      tpu.vector_store %arg12[%c0_24, %c0_25], %41 {strides = array<i32>} : memref<8x128xf32, #tpu.memory_space<vmem>>, vector<8x128xf32>,
    } else {
    }
    return
  }
  func.func @transform_0(%arg0: i32, %arg1: i32, %arg2: i32, %arg3: memref<4xi32, #tpu.memory_space<smem>>) -> (i32, i32) {
    %c0_i32 = arith.constant 0 : i32
    %c0_i32_0 = arith.constant 0 : i32
    %c0_i32_1 = arith.constant 0 : i32
    return %c0_i32, %c0_i32_0 : i32, i32
  }
  func.func @transform_1(%arg0: i32, %arg1: i32, %arg2: i32, %arg3: memref<4xi32, #tpu.memory_space<smem>>) -> (i32, i32) {
    %c0_i32 = arith.constant 0 : i32
    return %arg1, %arg2 : i32, i32
  }
  func.func @transform_2(%arg0: i32, %arg1: i32, %arg2: i32, %arg3: memref<4xi32, #tpu.memory_space<smem>>) -> (i32, i32, i32) {
    %c0_i32 = arith.constant 0 : i32
    %c0_i32_0 = arith.constant 0 : i32
    %c0_i32_1 = arith.constant 0 : i32
    return %arg0, %c0_i32, %c0_i32_0 : i32, i32, i32
  }
  func.func @transform_3(%arg0: i32, %arg1: i32, %arg2: i32, %arg3: memref<4xi32, #tpu.memory_space<smem>>) -> (i32, i32, i32) {
    %c0_i32 = arith.constant 0 : i32
    %c0_i32_0 = arith.constant 0 : i32
    %c0_i32_1 = arith.constant 0 : i32
    return %arg0, %c0_i32, %c0_i32_0 : i32, i32, i32
  }
  func.func @transform_4(%arg0: i32, %arg1: i32, %arg2: i32, %arg3: memref<4xi32, #tpu.memory_space<smem>>) -> (i32, i32, i32) {
    %c0_i32 = arith.constant 0 : i32
    %c0_i32_0 = arith.constant 0 : i32
    %c0_i32_1 = arith.constant 0 : i32
    return %arg0, %c0_i32, %c0_i32_0 : i32, i32, i32
  }
  func.func @transform_5(%arg0: i32, %arg1: i32, %arg2: i32, %arg3: memref<4xi32, #tpu.memory_space<smem>>) -> (i32, i32) {
    %c0_i32 = arith.constant 0 : i32
    %c0_i32_0 = arith.constant 0 : i32
    %c0_i32_1 = arith.constant 0 : i32
    return %c0_i32, %c0_i32_0 : i32, i32
  }
  func.func @transform_6(%arg0: i32, %arg1: i32, %arg2: i32, %arg3: memref<4xi32, #tpu.memory_space<smem>>) -> (i32, i32) {
    %c0_i32 = arith.constant 0 : i32
    %c0_i32_0 = arith.constant 0 : i32
    %c0_i32_1 = arith.constant 0 : i32
    return %c0_i32, %c0_i32_0 : i32, i32
  }
  func.func @transform_7(%arg0: i32, %arg1: i32, %arg2: i32, %arg3: memref<4xi32, #tpu.memory_space<smem>>) -> (i32, i32) {
    %c0_i32 = arith.constant 0 : i32
    %c0_i32_0 = arith.constant 0 : i32
    %c0_i32_1 = arith.constant 0 : i32
    return %c0_i32, %c0_i32_0 : i32, i32
  }
  func.func @transform_8(%arg0: i32, %arg1: i32, %arg2: i32, %arg3: memref<4xi32, #tpu.memory_space<smem>>) -> (i32, i32) {
    %c0_i32 = arith.constant 0 : i32
    %c0_i32_0 = arith.constant 0 : i32
    %c0_i32_1 = arith.constant 0 : i32
    return %c0_i32, %c0_i32_0 : i32, i32
  }
}

</mosaic_0001>

<bundles_post_ra>
// kernel: tpu_custom_call.1
= control target key start
LH: loop header
LB: loop body
LE: loop exit
PB: predicated region body
PF: predicated region fallthrough
CT: control target
= control target key end

     0   :  { %s2893_s0 = inlined_call_operand.hbm [shape: s32[4], index: 0, kind: input, shape index: {}]   ;;  %s2894_s1 = inlined_call_operand.hbm [shape: f32[256,128], index: 1, kind: input, shape index: {}]   ;;  %s2895_s2 = inlined_call_operand.hbm [shape: bf16[256,256], index: 2, kind: input, shape index: {}]   ;;  %s2896_s3 = inlined_call_operand.hbm [shape: bf16[3,128,128], index: 3, kind: input, shape index: {}]   ;;  %s2897_s4 = inlined_call_operand.vmem [shape: f32[3,1,128], index: 4, kind: input, shape index: {}]   ;;  %s2898_s5 = inlined_call_operand.vmem [shape: f32[3,1,128], index: 5, kind: input, shape index: {}]   ;;  %s2899_s6 = inlined_call_operand.vmem [shape: f32[8,256], index: 6, kind: input, shape index: {}]   ;;  %s2900_s7 = inlined_call_operand.hbm [shape: f32[128,128], index: 7, kind: input, shape index: {}]   ;;  %s2901_s8 = inlined_call_operand.vmem [shape: f32[1,128], index: 8, kind: input, shape index: {}]   ;;  %s2902_s9 = inlined_call_operand.hbm [shape: f32[8,128], index: 9, kind: output, shape index: {}]  }
   0x1   :  { %2922 = sst [smem:[#allocation27_spill]] %s2895_s2  ;;  %s1981_s11 = scalar_lea.hbm %s2893_s0, 16 }
   0x2   :  { %2923 = sst [smem:[#allocation28_spill]] %s2896_s3  ;;  %p1982_p0 = scmp.ne.s32.totalorder %s2893_s0, %s1981_s11 }
   0x3   :  { %2924 = sst [smem:[#allocation29_spill]] %s2897_s4  ;;  %p1985_p1 = scmp.lt.u32.totalorder %s1981_s11, %s2893_s0 }
   0x4   :  { %2925 = sst [smem:[#allocation30_spill]] %s2898_s5 }
   0x5   :  { %2926 = sst [smem:[#allocation31_spill]] %s2899_s6  ;;  %p1987_p2 = pnand %p1985_p1, %p1982_p0 }
   0x6   :  { %2927 = sst [smem:[#allocation32_spill]] %s2901_s8 }
   0x7   :  { %2928 = sst [smem:[#allocation33_spill]] %s2902_s9 }
   0x8   :  { %1990 = shalt.err (!%p1987_p2)  }
   0x9   :  { %s2259_s16 = smov [#allocation6]  }
   0xa   :  { %15 = dma.hbm_to_smem %s2893_s0, 16, %s2259_s16, [#allocation5] }
   0xb   :  { %2185 = dma.done.wait [#allocation5], 16 }
   0xc   :  { %2186 = vsyncadd [#allocation5], 4294967280 }
   0xd   :  { %17 = sfence }
   0xe   :  { %18 = vsyncpa [#allocation8], 0 }
   0xf   :  { %19 = vsyncpa [#allocation11], 0 }
  0x10   :  { %21 = vsyncpa [#allocation11 + $0x1], 0 }
  0x11   :  { %22 = vsyncpa [#allocation14], 0 }
  0x12   :  { %23 = vsyncpa [#allocation9], 0  ;;  %s2335_s19 = smov 0   ;;  %s2337_s20 = smov 0  }
  0x13   :  { %s2339_s21 = smov 0   ;;  %s2341_s22 = smov 0  }
  0x14   :  { %s2343_s23 = smov 0   ;;  %s2345_s24 = smov 0  }
  0x15   :  { %s2347_s0 = smov 0   ;;  %s2349_s25 = smov 0  }
  0x16   :  { %s2351_s26 = smov 0   ;;  %s2353_s27 = smov 0  }
  0x17   :  { %s2355_s28 = smov 0   ;;  %s2357_s29 = smov 0  }
  0x18   :  { %s2359_s30 = smov 0  }
  0x19 LB: > { %2929 = sst [smem:[#allocation22_spill]] %s2233_s0  ;;  %s41_s10 = sadd.s32 1, %s2245_s27  ;;  %s2257_s30 = sphi %s2359_s30, %s29_s30   ;;  %s2253_s29 = sphi %s2357_s29, %s2993_s29   ;;  %s2249_s28 = sphi %s2355_s28, %s2992_s28   ;;  %s2245_s27 = sphi %s2353_s27, %s2991_s27   ;;  %s2241_s26 = sphi %s2351_s26, %s2990_s26   ;;  %s2237_s25 = sphi %s2349_s25, %s2989_s25   ;;  %s2233_s0 = sphi %s2347_s0, %s2988_s0   ;;  %s2229_s24 = sphi %s2345_s24, %s2987_s24   ;;  %s2225_s23 = sphi %s2343_s23, %s2986_s23   ;;  %s2221_s22 = sphi %s2341_s22, %s2985_s22   ;;  %s2217_s21 = sphi %s2339_s21, %s2984_s21   ;;  %s2213_s20 = sphi %s2337_s20, %s2983_s20   ;;  %s2209_s19 = sphi %s2335_s19, %s2982_s19  }
  0x1a   : > { %2930 = sst [smem:[#allocation23_spill]] %s2237_s25  ;;  %s44_s11 = sadd.s32 1, %s2249_s28 }
  0x1b   : > { %2931 = sst [smem:[#allocation24_spill]] %s2241_s26  ;;  %p42_p3 = scmp.ge.s32.totalorder %s41_s10, 2 }
  0x1c   : > { %s78_s12 = sadd.s32 1, %s2229_s24  ;;  %p85_p4 = scmp.ne.s32.totalorder %s2229_s24, %s2225_s23 }
  0x1d   : > { %p2914_p5 = scmp.eq.s32.totalorder %s2257_s30, 0  ;;  %s2995_s10 = smov (%p42_p3, %s41_s10), 0 }
  0x1e   : > { %2932 = sst [smem:[#allocation25_spill]] %s2995_s10  ;;  %s2997_s11 = smov (!%p42_p3, %s44_s11), %s2249_s28 }
  0x1f   : > { %s74_s13 = ssub.s32 %s2245_s27, %s2995_s10  ;;  %p2415_p6 = por %p2914_p5, %p85_p4 }
  0x20   : > { %p2917_p7 = scmp.ge.s32.totalorder %s2997_s11, 2  ;;  %p2913_p8 = scmp.lt.s32.totalorder %s2257_s30, 12 }
  0x21   : > { %s309_s16 = sand.u32 1, %s2257_s30   ;;  %s311_s17 = sand.u32 1, %s2229_s24  }
  0x22   : > { %s2424_s15 = scalar_select %p2917_p7, 0, %s2997_s11  }
  0x23   : > { %s1498_s8 = sshll.u32 %s311_s17, 6  ;;  %s1539_s10 = sshll.u32 %s2249_s28, 5 }
  0x24   : > { %2934 = sst [smem:[#allocation26_spill]] %s2424_s15  ;;  %s73_s18 = ssub.s32 %s2249_s28, %s2424_s15 }
  0x25   : > { %s75_s9 = sor.u32 %s74_s13, %s73_s18  ;;  %s313_s6 = scalar_lea.vmem [#allocation10], %s1498_s8 }
  0x26   : > { %p76_p9 = scmp.eq.s32.totalorder %s75_s9, 0  ;;  %s322_s5 = sshll.u32 %s313_s6, 4  ;;  %s2435_s5 = int_to_ptr.vmem [resolvable:$true] %s322_s5 }
  0x27   : > { %s319_s0 = sadd.s32 %s2245_s27, %s1539_s10  ;;  %p2441_p10 = pnand %p2913_p8, %p2415_p6 }
  0x28   : > { %s2432_s4 = scalar_select %p76_p9, %s2229_s24, %s78_s12  }
  0x29   : > { %s1501_s25 = sshll.u32 %s319_s0, 6  ;;  %s2936_s2 = sld [smem:[#allocation27_spill]] }
  0x2a   : > { %s2450_s6 = scalar_lea.sflag [#allocation11], %s309_s16  ;;  %p1993_p12 = pneg %p2441_p10 }
  0x2f   : > { %s2448_s9 = scalar_lea.hbm %s2936_s2, %s1501_s25  ;;  %s1996_s10 = scalar_lea.hbm %s2936_s2, 4096 }
  0x30   : > { %s1991_s8 = scalar_lea.hbm %s2448_s9, 1024  ;;  %p1997_p1 = scmp.lt.u32.totalorder %s2448_s9, %s2936_s2 }
  0x31   : > { %p1992_p11 = scmp.ne.s32.totalorder %s2448_s9, %s1991_s8  ;;  %p1998_p2 = scmp.lt.u32.totalorder %s1996_s10, %s1991_s8 }
  0x32   : > { %p2000_p4 = scmp.lt.u32.totalorder %s1991_s8, %s2448_s9 }
  0x33   : > { %p1994_p13 = pnand %p1993_p12, %p1992_p11  ;;  %p1999_p3 = por %p1998_p2, %p1997_p1 }
  0x35   : > { %p1995_p0 = pneg %p1994_p13  ;;  %p2001_p6 = por %p2000_p4, %p1999_p3 }
  0x37   : > { %p2002_p9 = pnand %p2001_p6, %p1995_p0 }
  0x39   : > { %2005 = shalt.err (!%p2002_p9)
}
  0x3a   : > { %s2006_s13 = scalar_lea.vmem %s2435_s5, 1024  ;;  %s2260_s14 = smov [#allocation10]  }
  0x3b   : > { %p2007_p11 = scmp.ne.s32.totalorder %s2435_s5, %s2006_s13  ;;  %s2011_s15 = sshll.u32 %s2260_s14, 4  ;;  %s2012_s15 = int_to_ptr.vmem [resolvable:$false] %s2011_s15 }
  0x3c   : > { %s2013_s16 = scalar_lea.vmem %s2012_s15, 2048  ;;  %p2014_p5 = scmp.lt.s32.totalorder %s2435_s5, %s2012_s15 }
  0x3d   : > { %p2009_p13 = pnand %p2007_p11, %p1993_p12  ;;  %p2015_p1 = scmp.lt.s32.totalorder %s2013_s16, %s2006_s13 }
  0x3f   : > { %p2010_p8 = pneg %p2009_p13  ;;  %p2016_p2 = por %p2015_p1, %p2014_p5 }
  0x41   : > { %p2017_p3 = pnand %p2016_p2, %p2010_p8 }
  0x43   : > { %2020 = shalt.err (!%p2017_p3)
}
  0x44   : > { %s2261_s17 = smov 128   ;;  %s2915_s18 = smov 64  }
  0x45   : > { %s2921_s8 = smov 4   ;;  %s2482_s0 = sadd.s32 4294967295, %s2257_s30  }
  0x46   : > { %1838 = dma.hbm_to_vmem [thread:$0]  (!%p2441_p10), %s2448_s9, 1024, %s2435_s5, %s2450_s6, %s2261_s17, %s2915_s18, %s2921_s8  }
  0x47   : > { %p91_p5 = scmp.ne.s32.totalorder %s2225_s23, %s2221_s22  ;;  %p2916_p8 = scmp.eq.s32.totalorder %s2482_s0, 0 }
  0x48   : > { %p117_p12 = scmp.ne.s32.totalorder %s2213_s20, %s2209_s19  ;;  %p1494_p0 = scmp.ge.s32.totalorder %s2257_s30, 1 }
  0x49   : > { %p264_p4 = scmp.lt.s32.totalorder %s2257_s30, 13  ;;  %p2493_p6 = por %p2916_p8, %p91_p5 }
  0x4a   : > { %p2499_p9 = por %p117_p12, %p2916_p8  ;;  %s2264_s19 = smov [#allocation7]  }
  0x4b   : > { %s2937_s3 = scalar_select %p2493_p6, 1, 0 }
  0x4c   : > { %s2938_s26 = scalar_select %p2499_p9, 1, 0 }
  0x4d   : > { %p2503_p10 = pnand %p1494_p0, %p264_p4  ;;  %s276_s22 = sshll.u32 %s2264_s19, 4  ;;  %s277_s22 = int_to_ptr.vmem [resolvable:$true] %s276_s22 }
  0x4e   : > { %s2265_s10 = smov [#allocation13]   ;;  %s2021_s14 = scalar_lea.hbm %s2894_s1, 4096 }
  0x4f   : > { %s2939_s5 = scalar_select %p2503_p10, 1, 0 }
  0x50   : > { %p1828_p11 = pneg %p2503_p10  ;;  %s292_s25 = sshll.u32 %s2265_s10, 4  ;;  %s2515_s25 = int_to_ptr.vmem [resolvable:$true] %s292_s25 }
  0x51   : > { %p2022_p1 = scmp.ne.s32.totalorder %s2894_s1, %s2021_s14  ;;  %p2028_p12 = scmp.lt.u32.totalorder %s2021_s14, %s2894_s1 }
  0x52   : > { %p2511_p13 = pnand %p1828_p11, %p2916_p8 }
  0x54   : > { %p2023_p2 = pneg %p2511_p13 }
  0x56   : > { %p2024_p3 = pnand %p2023_p2, %p2022_p1 }
  0x58   : > { %p2025_p5 = pneg %p2024_p3 }
  0x5a   : > { %p2030_p0 = pnand %p2028_p12, %p2025_p5 }
  0x5c   : > { %2033 = shalt.err (!%p2030_p0)
}
  0x5d   : > { %s2034_s10 = scalar_lea.vmem %s277_s22, 4096  ;;  %p2042_p7 = scmp.lt.s32.totalorder %s277_s22, %s277_s22 }
  0x5e   : > { %p2035_p4 = scmp.ne.s32.totalorder %s277_s22, %s2034_s10  ;;  %p2043_p9 = scmp.lt.s32.totalorder %s2034_s10, %s2034_s10 }
  0x60   : > { %p2037_p11 = pnand %p2035_p4, %p2023_p2  ;;  %p2044_p6 = por %p2043_p9, %p2042_p7 }
  0x62   : > { %p2038_p8 = pneg %p2037_p11 }
  0x64   : > { %p2045_p10 = pnand %p2044_p6, %p2038_p8 }
  0x66   : > { %2048 = shalt.err (!%p2045_p10)
}
  0x67   : > { %s2266_s12 = smov 8   ;;  %s2049_s16 = scalar_lea.hbm %s2900_s7, 2048 }
  0x68   : > { %1831 = dma.hbm_to_vmem [thread:$0]  (!%p2511_p13), %s2894_s1, 4096, %s277_s22, [#allocation8], %s2261_s17, %s2261_s17, %s2266_s12  }
  0x69   : > { %p2050_p7 = scmp.ne.s32.totalorder %s2900_s7, %s2049_s16  ;;  %p2056_p9 = scmp.lt.u32.totalorder %s2049_s16, %s2900_s7 }
  0x6b   : > { %p2052_p8 = pnand %p2050_p7, %p2023_p2 }
  0x6d   : > { %p2053_p6 = pneg %p2052_p8 }
  0x6f   : > { %p2058_p10 = pnand %p2056_p9, %p2053_p6 }
  0x71   : > { %2061 = shalt.err (!%p2058_p10)
}
  0x72   : > { %s2062_s22 = scalar_lea.vmem %s2515_s25, 2048  ;;  %p2070_p12 = scmp.lt.s32.totalorder %s2515_s25, %s2515_s25 }
  0x73   : > { %p2063_p1 = scmp.ne.s32.totalorder %s2515_s25, %s2062_s22  ;;  %p2071_p0 = scmp.lt.s32.totalorder %s2062_s22, %s2062_s22 }
  0x75   : > { %p2065_p3 = pnand %p2063_p1, %p2023_p2  ;;  %p2072_p4 = por %p2071_p0, %p2070_p12 }
  0x77   : > { %p2066_p5 = pneg %p2065_p3 }
  0x79   : > { %p2073_p11 = pnand %p2072_p4, %p2066_p5 }
  0x7b   : > { %2076 = shalt.err (!%p2073_p11)
}
  0x7c   : > { %1834 = dma.hbm_to_vmem [thread:$0]  (!%p2511_p13), %s2900_s7, 2048, %s2515_s25, [#allocation14], %s2261_s17, %s2261_s17, %s2266_s12  }
  0x7d   : > { %s48_s18 = sadd.s32 1, %s2253_s29  ;;  %p2941_p2 = scmp.ge.s32.totalorder %s2997_s11, 2 }
  0x7e   : > { %p111_p7 = scmp.ne.s32.totalorder %s2217_s21, %s2213_s20  ;;  %s334_s9 = sand.u32 1, %s2217_s21  }
  0x7f   : > { %s2999_s18 = smov (!%p2941_p2, %s48_s18), %s2253_s29  ;;  %s1502_s13 = sshll.u32 %s334_s9, 6 }
  0x80   : > { %p50_p8 = scmp.ge.s32.totalorder %s2999_s18, 3  ;;  %p2942_p6 = scmp.eq.s32.totalorder %s2257_s30, 0 }
  0x81   : > { %s1540_s14 = sshll.u32 %s2253_s29, 10  ;;  %s336_s15 = scalar_lea.vmem [#allocation12], %s1502_s13 }
  0x82   : > { %p113_p9 = por %p111_p7, %p2942_p6  ;;  %s3001_s18 = smov (%p50_p8, %s2999_s18), 0 }
  0x83   : > { %s343_s16 = sshll.u32 %s336_s15, 4  ;;  %s101_s19 = ssub.s32 %s2253_s29, %s3001_s18  ;;  %s2588_s16 = int_to_ptr.vmem [resolvable:$true] %s343_s16 }
  0x84   : > { %s104_s10 = sadd.s32 1, %s2217_s21  ;;  %p102_p13 = scmp.eq.s32.totalorder %s101_s19, 0 }
  0x85   : > { %s2943_s25 = sld [smem:[#allocation28_spill]]  ;;  %p2945_p10 = scmp.lt.s32.totalorder %s2257_s30, 12 }
  0x86   : > { %s2597_s8 = scalar_select %p102_p13, %s2217_s21, %s104_s10  }
  0x87   : > { %p2592_p1 = pnand %p2945_p10, %p113_p9 }
  0x89   : > { %p2079_p5 = pneg %p2592_p1 }
  0x8b   : > { %s2944_s12 = smov %s2943_s25  ;;  %s2586_s22 = scalar_lea.hbm %s2943_s25, %s1540_s14 }
  0x8c   : > { %s2077_s9 = scalar_lea.hbm %s2586_s22, 1024  ;;  %s2082_s15 = scalar_lea.hbm %s2944_s12, 3072 }
  0x8d   : > { %p2078_p3 = scmp.ne.s32.totalorder %s2586_s22, %s2077_s9  ;;  %p2083_p4 = scmp.lt.u32.totalorder %s2586_s22, %s2944_s12 }
  0x8e   : > { %p2084_p11 = scmp.lt.u32.totalorder %s2082_s15, %s2077_s9  ;;  %p2086_p7 = scmp.lt.u32.totalorder %s2077_s9, %s2586_s22 }
  0x8f   : > { %p2080_p12 = pnand %p2079_p5, %p2078_p3 }
  0x90   : > { %p2085_p2 = por %p2084_p11, %p2083_p4 }
  0x91   : > { %p2081_p0 = pneg %p2080_p12 }
  0x92   : > { %p2087_p8 = por %p2086_p7, %p2085_p2 }
  0x94   : > { %p2088_p6 = pnand %p2087_p8, %p2081_p0 }
  0x96   : > { %2091 = shalt.err (!%p2088_p6)
}
  0x97   : > { %s2092_s10 = scalar_lea.vmem %s2588_s16, 1024  ;;  %s2267_s11 = smov [#allocation12]  }
  0x98   : > { %p2093_p9 = scmp.ne.s32.totalorder %s2588_s16, %s2092_s10  ;;  %s2097_s25 = sshll.u32 %s2267_s11, 4  ;;  %s2098_s25 = int_to_ptr.vmem [resolvable:$false] %s2097_s25 }
  0x99   : > { %s2099_s13 = scalar_lea.vmem %s2098_s25, 2048  ;;  %p2100_p3 = scmp.lt.s32.totalorder %s2588_s16, %s2098_s25 }
  0x9a   : > { %p2095_p13 = pnand %p2093_p9, %p2079_p5  ;;  %p2101_p12 = scmp.lt.s32.totalorder %s2099_s13, %s2092_s10 }
  0x9c   : > { %p2096_p10 = pneg %p2095_p13  ;;  %p2102_p4 = por %p2101_p12, %p2100_p3 }
  0x9e   : > { %p2103_p11 = pnand %p2102_p4, %p2096_p10 }
  0xa0   : > { %2106 = shalt.err (!%p2103_p11)
}
  0xa1   : > { %s2947_s9 = smov 4   ;;  %s2948_s14 = smov 64  }
  0xa2   : > { %1841 = dma.hbm_to_vmem [thread:$0]  (!%p2592_p1), %s2586_s22, 1024, %s2588_s16, %s2450_s6, %s2948_s14, %s2948_s14, %s2947_s9  }
  0xa3   : > { %p2949_p5 = scmp.ne.s32.totalorder %s2939_s5, 0 }
  0xa4   : > { %p2950_p0 = scmp.eq.s32.totalorder (!%p2949_p5), %s2482_s0, 0 }
  0xa5   : > { %367 = sbr.rel (%p2949_p5) target bundleno = 1328 (0x530), region = 52 }
  0xac   : > { %2188 = dma.done.wait (%p2950_p0), [#allocation8], 4096   ;;  %p2951_p2 = pmov %p2950_p0 }
  0xad   : > { %s373_s2 = sand.u32 1, %s2482_s0   ;;  %s375_s15 = sand.u32 1, %s2225_s23  }
  0xae   : > { %2190 = vsyncadd (%p2951_p2), [#allocation8], 4294963200  ;;  %s1507_s19 = sshll.u32 %s375_s15, 6  ;;  %s374_s17 = scalar_lea.sflag [#allocation11], %s373_s2 }
  0xaf   : > { %s2636_s10 = scalar_lea.vmem [#allocation10], %s1507_s19  ;;  %p2952_p7 = scmp.ne.s32.totalorder %s2937_s3, 0 }
  0xb1   : > { %2192 = dma.done.wait (%p2952_p7), %s374_s17, 1024  }
  0xb2   : > { %2194 = vsyncadd (%p2952_p7), %s374_s17, 4294966272  ;;  %s384_s6 = sand.u32 1, %s2213_s20   ;;  %p2953_p1 = scmp.ne.s32.totalorder %s2938_s26, 0 }
  0xb3   : > { %s1508_s5 = sshll.u32 %s384_s6, 6 }
  0xb4   : > { %s2643_s16 = scalar_lea.vmem [#allocation12], %s1508_s5 }
  0xb5   : > { %2196 = dma.done.wait (%p2953_p1), %s374_s17, 1024  }
  0xb6   : > { %2198 = vsyncadd (%p2953_p1), %s374_s17, 4294966272  ;;  %p2954_p8 = pmov %p2950_p0 }
  0xb7   : > { %p2955_p6 = pmov %p2950_p0 }
  0xb8   : > { %2200 = dma.done.wait (%p2954_p8), [#allocation14], 2048  }
  0xb9   : > { %2202 = vsyncadd (%p2955_p6), [#allocation14], 4294965248  ;;  %s2956_s22 = sld [smem:[#allocation24_spill]]  ;;  %s2957_s3 = sld [smem:[#allocation23_spill]] }
  0xba   : > { %s2958_s11 = sld [smem:[#allocation22_spill]]  ;;  %s2959_s13 = sld [smem:[#allocation29_spill]] }
  0xbb   : > { %s2960_s15 = sld [smem:[#allocation30_spill]] }
  0xbf   : > { %p430_p9 = scmp.lt.s32.totalorder %s2956_s22, 2  ;;  %p437_p13 = scmp.eq.s32.totalorder %s2956_s22, 0 }
  0xc0   : > { %p438_p10 = scmp.eq.s32.totalorder %s2957_s3, 0  ;;  %p441_p12 = scmp.eq.s32.totalorder %s2958_s11, 0 }
  0xc1   : > { %s3003_s22 = smov (!%p430_p9, %s2956_s22), 2 }
  0xc2   : > { %p439_p3 = pnand %p438_p10, %p437_p13  ;;  %s432_s9 = scalar_lea.vmem %s2959_s13, %s3003_s22 }
  0xc3   : > { %s435_s19 = scalar_lea.vmem %s2960_s15, %s3003_s22 }
  0xc4   : > { %p440_p4 = pneg %p439_p3 }
  0xc6   : > { %p442_p11 = pnand %p441_p12, %p440_p4 }
  0xc7   : > { %v446_v0 = vld [vmem:[#allocation7] sm:$0xff] (!%p442_p11)  ;;  %v447_v1 = vld [vmem:[#allocation7 + $0x8] sm:$0xff] (!%p442_p11)  ;;  %v448_v2 = vld [vmem:[#allocation7 + $0x10] sm:$0xff] (!%p442_p11) }
  0xc8   : > { %445 = sbr.rel (%p442_p11) target bundleno = 216 (0xd8), region = 72  ;;  %478 = vst [vmem:[#allocation2] sm:$0xff] (!%p442_p11), %v446_v0  ;;  %479 = vst [vmem:[#allocation2 + $0x8] sm:$0xff] (!%p442_p11), %v447_v1  ;;  %v449_v3 = vld [vmem:[#allocation7 + $0x18] sm:$0xff] (!%p442_p11)  ;;  %v450_v4 = vld [vmem:[#allocation7 + $0x20] sm:$0xff] (!%p442_p11) }
  0xc9   : > { %480 = vst [vmem:[#allocation2 + $0x10] sm:$0xff] (!%p442_p11), %v448_v2  ;;  %v451_v5 = vld [vmem:[#allocation7 + $0x28] sm:$0xff] (!%p442_p11)  ;;  %481 = vst [vmem:[#allocation2 + $0x18] sm:$0xff] (!%p442_p11), %v449_v3  ;;  %v452_v6 = vld [vmem:[#allocation7 + $0x30] sm:$0xff] (!%p442_p11) }
  0xca   : > { %482 = vst [vmem:[#allocation2 + $0x20] sm:$0xff] (!%p442_p11), %v450_v4  ;;  %483 = vst [vmem:[#allocation2 + $0x28] sm:$0xff] (!%p442_p11), %v451_v5  ;;  %v453_v7 = vld [vmem:[#allocation7 + $0x38] sm:$0xff] (!%p442_p11)  ;;  %v454_v8 = vld [vmem:[#allocation7 + $0x40] sm:$0xff] (!%p442_p11) }
  0xcb   : > { %484 = vst [vmem:[#allocation2 + $0x30] sm:$0xff] (!%p442_p11), %v452_v6  ;;  %485 = vst [vmem:[#allocation2 + $0x38] sm:$0xff] (!%p442_p11), %v453_v7  ;;  %v455_v9 = vld [vmem:[#allocation7 + $0x48] sm:$0xff] (!%p442_p11)  ;;  %v456_v10 = vld [vmem:[#allocation7 + $0x50] sm:$0xff] (!%p442_p11) }
  0xcc   : > { %486 = vst [vmem:[#allocation2 + $0x40] sm:$0xff] (!%p442_p11), %v454_v8  ;;  %v457_v11 = vld [vmem:[#allocation7 + $0x58] sm:$0xff] (!%p442_p11)  ;;  %487 = vst [vmem:[#allocation2 + $0x48] sm:$0xff] (!%p442_p11), %v455_v9  ;;  %v458_v12 = vld [vmem:[#allocation7 + $0x60] sm:$0xff] (!%p442_p11) }
  0xcd   : > { %488 = vst [vmem:[#allocation2 + $0x50] sm:$0xff] (!%p442_p11), %v456_v10  ;;  %489 = vst [vmem:[#allocation2 + $0x58] sm:$0xff] (!%p442_p11), %v457_v11  ;;  %v459_v13 = vld [vmem:[#allocation7 + $0x68] sm:$0xff] (!%p442_p11)  ;;  %v460_v14 = vld [vmem:[#allocation7 + $0x70] sm:$0xff] (!%p442_p11) }
  0xce   : > { %490 = vst [vmem:[#allocation2 + $0x60] sm:$0xff] (!%p442_p11), %v458_v12  ;;  %491 = vst [vmem:[#allocation2 + $0x68] sm:$0xff] (!%p442_p11), %v459_v13  ;;  %v461_v15 = vld [vmem:[#allocation7 + $0x78] sm:$0xff] (!%p442_p11)  ;;  %v462_v16 = vld [vmem:[#allocation7 + $0x80] sm:$0xff] (!%p442_p11) }
  0xcf   : > { %492 = vst [vmem:[#allocation2 + $0x70] sm:$0xff] %v460_v14  ;;  %v463_v17 = vld [vmem:[#allocation7 + $0x88] sm:$0xff]  ;;  %493 = vst [vmem:[#allocation2 + $0x78] sm:$0xff] %v461_v15  ;;  %v464_v18 = vld [vmem:[#allocation7 + $0x90] sm:$0xff] }
  0xd0   : > { %494 = vst [vmem:[#allocation2 + $0x80] sm:$0xff] %v462_v16  ;;  %495 = vst [vmem:[#allocation2 + $0x88] sm:$0xff] %v463_v17  ;;  %v465_v19 = vld [vmem:[#allocation7 + $0x98] sm:$0xff]  ;;  %v466_v20 = vld [vmem:[#allocation7 + $0xa0] sm:$0xff] }
  0xd1   : > { %496 = vst [vmem:[#allocation2 + $0x90] sm:$0xff] %v464_v18  ;;  %497 = vst [vmem:[#allocation2 + $0x98] sm:$0xff] %v465_v19  ;;  %v467_v21 = vld [vmem:[#allocation7 + $0xa8] sm:$0xff]  ;;  %v468_v22 = vld [vmem:[#allocation7 + $0xb0] sm:$0xff] }
  0xd2   : > { %498 = vst [vmem:[#allocation2 + $0xa0] sm:$0xff] %v466_v20  ;;  %v469_v23 = vld [vmem:[#allocation7 + $0xb8] sm:$0xff]  ;;  %499 = vst [vmem:[#allocation2 + $0xa8] sm:$0xff] %v467_v21  ;;  %v470_v24 = vld [vmem:[#allocation7 + $0xc0] sm:$0xff] }
  0xd3   : > { %500 = vst [vmem:[#allocation2 + $0xb0] sm:$0xff] %v468_v22  ;;  %501 = vst [vmem:[#allocation2 + $0xb8] sm:$0xff] %v469_v23  ;;  %v471_v25 = vld [vmem:[#allocation7 + $0xc8] sm:$0xff]  ;;  %v472_v26 = vld [vmem:[#allocation7 + $0xd0] sm:$0xff] }
  0xd4   : > { %502 = vst [vmem:[#allocation2 + $0xc0] sm:$0xff] %v470_v24  ;;  %503 = vst [vmem:[#allocation2 + $0xc8] sm:$0xff] %v471_v25  ;;  %v473_v27 = vld [vmem:[#allocation7 + $0xd8] sm:$0xff]  ;;  %v474_v28 = vld [vmem:[#allocation7 + $0xe0] sm:$0xff] }
  0xd5   : > { %504 = vst [vmem:[#allocation2 + $0xd0] sm:$0xff] %v472_v26  ;;  %v475_v29 = vld [vmem:[#allocation7 + $0xe8] sm:$0xff]  ;;  %505 = vst [vmem:[#allocation2 + $0xd8] sm:$0xff] %v473_v27  ;;  %v476_v30 = vld [vmem:[#allocation7 + $0xf0] sm:$0xff] }
  0xd6   : > { %506 = vst [vmem:[#allocation2 + $0xe0] sm:$0xff] %v474_v28  ;;  %507 = vst [vmem:[#allocation2 + $0xe8] sm:$0xff] %v475_v29  ;;  %v477_v31 = vld [vmem:[#allocation7 + $0xf8] sm:$0xff] }
  0xd7   : > { %508 = vst [vmem:[#allocation2 + $0xf0] sm:$0xff] %v476_v30  ;;  %509 = vst [vmem:[#allocation2 + $0xf8] sm:$0xff] %v477_v31 }
  0xd8 PF: > { %s2961_s17 = sld [smem:[#allocation24_spill]] }
  0xde   : > { %p510_p5 = scmp.gt.s32.totalorder %s2961_s17, 0 }
  0xe0   : > { %p511_p0 = pnand %p510_p5, %p438_p10 }
  0xe2   : > { %p512_p2 = pneg %p511_p0 }
  0xe4   : > { %p513_p7 = pnand %p512_p2, %p441_p12 }
  0xe5   : > { %v517_v32 = vld [vmem:[#allocation3] sm:$0xff] (!%p513_p7)  ;;  %v518_v33 = vld [vmem:[#allocation3 + $0x8] sm:$0xff] (!%p513_p7)  ;;  %v519_v34 = vld [vmem:[#allocation3 + $0x10] sm:$0xff] (!%p513_p7) }
  0xe6   : > { %516 = sbr.rel (%p513_p7) target bundleno = 246 (0xf6), region = 76  ;;  %549 = vst [vmem:[#allocation2] sm:$0xff] (!%p513_p7), %v517_v32  ;;  %550 = vst [vmem:[#allocation2 + $0x8] sm:$0xff] (!%p513_p7), %v518_v33  ;;  %v520_v35 = vld [vmem:[#allocation3 + $0x18] sm:$0xff] (!%p513_p7)  ;;  %v521_v36 = vld [vmem:[#allocation3 + $0x20] sm:$0xff] (!%p513_p7) }
  0xe7   : > { %551 = vst [vmem:[#allocation2 + $0x10] sm:$0xff] (!%p513_p7), %v519_v34  ;;  %v522_v37 = vld [vmem:[#allocation3 + $0x28] sm:$0xff] (!%p513_p7)  ;;  %552 = vst [vmem:[#allocation2 + $0x18] sm:$0xff] (!%p513_p7), %v520_v35  ;;  %v523_v38 = vld [vmem:[#allocation3 + $0x30] sm:$0xff] (!%p513_p7) }
  0xe8   : > { %553 = vst [vmem:[#allocation2 + $0x20] sm:$0xff] (!%p513_p7), %v521_v36  ;;  %554 = vst [vmem:[#allocation2 + $0x28] sm:$0xff] (!%p513_p7), %v522_v37  ;;  %v524_v39 = vld [vmem:[#allocation3 + $0x38] sm:$0xff] (!%p513_p7)  ;;  %v525_v40 = vld [vmem:[#allocation3 + $0x40] sm:$0xff] (!%p513_p7) }
  0xe9   : > { %555 = vst [vmem:[#allocation2 + $0x30] sm:$0xff] (!%p513_p7), %v523_v38  ;;  %556 = vst [vmem:[#allocation2 + $0x38] sm:$0xff] (!%p513_p7), %v524_v39  ;;  %v526_v41 = vld [vmem:[#allocation3 + $0x48] sm:$0xff] (!%p513_p7)  ;;  %v527_v42 = vld [vmem:[#allocation3 + $0x50] sm:$0xff] (!%p513_p7) }
  0xea   : > { %557 = vst [vmem:[#allocation2 + $0x40] sm:$0xff] (!%p513_p7), %v525_v40  ;;  %v528_v43 = vld [vmem:[#allocation3 + $0x58] sm:$0xff] (!%p513_p7)  ;;  %558 = vst [vmem:[#allocation2 + $0x48] sm:$0xff] (!%p513_p7), %v526_v41  ;;  %v529_v44 = vld [vmem:[#allocation3 + $0x60] sm:$0xff] (!%p513_p7) }
  0xeb   : > { %559 = vst [vmem:[#allocation2 + $0x50] sm:$0xff] (!%p513_p7), %v527_v42  ;;  %560 = vst [vmem:[#allocation2 + $0x58] sm:$0xff] (!%p513_p7), %v528_v43  ;;  %v530_v45 = vld [vmem:[#allocation3 + $0x68] sm:$0xff] (!%p513_p7)  ;;  %v531_v46 = vld [vmem:[#allocation3 + $0x70] sm:$0xff] (!%p513_p7) }
  0xec   : > { %561 = vst [vmem:[#allocation2 + $0x60] sm:$0xff] (!%p513_p7), %v529_v44  ;;  %562 = vst [vmem:[#allocation2 + $0x68] sm:$0xff] (!%p513_p7), %v530_v45  ;;  %v532_v47 = vld [vmem:[#allocation3 + $0x78] sm:$0xff] (!%p513_p7)  ;;  %v533_v48 = vld [vmem:[#allocation3 + $0x80] sm:$0xff] (!%p513_p7) }
  0xed   : > { %563 = vst [vmem:[#allocation2 + $0x70] sm:$0xff] %v531_v46  ;;  %v534_v49 = vld [vmem:[#allocation3 + $0x88] sm:$0xff]  ;;  %564 = vst [vmem:[#allocation2 + $0x78] sm:$0xff] %v532_v47  ;;  %v535_v50 = vld [vmem:[#allocation3 + $0x90] sm:$0xff] }
  0xee   : > { %565 = vst [vmem:[#allocation2 + $0x80] sm:$0xff] %v533_v48  ;;  %566 = vst [vmem:[#allocation2 + $0x88] sm:$0xff] %v534_v49  ;;  %v536_v51 = vld [vmem:[#allocation3 + $0x98] sm:$0xff]  ;;  %v537_v52 = vld [vmem:[#allocation3 + $0xa0] sm:$0xff] }
  0xef   : > { %567 = vst [vmem:[#allocation2 + $0x90] sm:$0xff] %v535_v50  ;;  %568 = vst [vmem:[#allocation2 + $0x98] sm:$0xff] %v536_v51  ;;  %v538_v53 = vld [vmem:[#allocation3 + $0xa8] sm:$0xff]  ;;  %v539_v54 = vld [vmem:[#allocation3 + $0xb0] sm:$0xff] }
  0xf0   : > { %569 = vst [vmem:[#allocation2 + $0xa0] sm:$0xff] %v537_v52  ;;  %v540_v55 = vld [vmem:[#allocation3 + $0xb8] sm:$0xff]  ;;  %570 = vst [vmem:[#allocation2 + $0xa8] sm:$0xff] %v538_v53  ;;  %v541_v56 = vld [vmem:[#allocation3 + $0xc0] sm:$0xff] }
  0xf1   : > { %571 = vst [vmem:[#allocation2 + $0xb0] sm:$0xff] %v539_v54  ;;  %572 = vst [vmem:[#allocation2 + $0xb8] sm:$0xff] %v540_v55  ;;  %v542_v57 = vld [vmem:[#allocation3 + $0xc8] sm:$0xff]  ;;  %v543_v58 = vld [vmem:[#allocation3 + $0xd0] sm:$0xff] }
  0xf2   : > { %573 = vst [vmem:[#allocation2 + $0xc0] sm:$0xff] %v541_v56  ;;  %574 = vst [vmem:[#allocation2 + $0xc8] sm:$0xff] %v542_v57  ;;  %v544_v59 = vld [vmem:[#allocation3 + $0xd8] sm:$0xff]  ;;  %v545_v60 = vld [vmem:[#allocation3 + $0xe0] sm:$0xff] }
  0xf3   : > { %575 = vst [vmem:[#allocation2 + $0xd0] sm:$0xff] %v543_v58  ;;  %v546_v61 = vld [vmem:[#allocation3 + $0xe8] sm:$0xff]  ;;  %576 = vst [vmem:[#allocation2 + $0xd8] sm:$0xff] %v544_v59  ;;  %v547_v62 = vld [vmem:[#allocation3 + $0xf0] sm:$0xff] }
  0xf4   : > { %577 = vst [vmem:[#allocation2 + $0xe0] sm:$0xff] %v545_v60  ;;  %578 = vst [vmem:[#allocation2 + $0xe8] sm:$0xff] %v546_v61  ;;  %v548_v63 = vld [vmem:[#allocation3 + $0xf8] sm:$0xff] }
  0xf5   : > { %579 = vst [vmem:[#allocation2 + $0xf0] sm:$0xff] %v547_v62  ;;  %580 = vst [vmem:[#allocation2 + $0xf8] sm:$0xff] %v548_v63 }
  0xf6 PF: > { %s2964_s3 = sld [smem:[#allocation22_spill]] }
  0xfc   : > { %p1510_p1 = scmp.ne.s32.totalorder %s2964_s3, 0 }
  0xfd   : > { %v2268_v0 = vmov (!%p1510_p1), 0.0  }
  0xfe   : > { %583 = sbr.rel (%p1510_p1) target bundleno = 262 (0x106), region = 80  ;;  %584 = vst [vmem:[#allocation4] sm:$0xff] (!%p1510_p1), %v2268_v0  ;;  %585 = vst [vmem:[#allocation4 + $0x8] sm:$0xff] (!%p1510_p1), %v2268_v0 }
  0xff   : > { %586 = vst [vmem:[#allocation4 + $0x10] sm:$0xff] (!%p1510_p1), %v2268_v0  ;;  %587 = vst [vmem:[#allocation4 + $0x18] sm:$0xff] (!%p1510_p1), %v2268_v0 }
 0x100   : > { %588 = vst [vmem:[#allocation4 + $0x20] sm:$0xff] (!%p1510_p1), %v2268_v0  ;;  %589 = vst [vmem:[#allocation4 + $0x28] sm:$0xff] (!%p1510_p1), %v2268_v0 }
 0x101   : > { %590 = vst [vmem:[#allocation4 + $0x30] sm:$0xff] (!%p1510_p1), %v2268_v0  ;;  %591 = vst [vmem:[#allocation4 + $0x38] sm:$0xff] (!%p1510_p1), %v2268_v0 }
 0x102   : > { %592 = vst [vmem:[#allocation4 + $0x40] sm:$0xff] (!%p1510_p1), %v2268_v0  ;;  %593 = vst [vmem:[#allocation4 + $0x48] sm:$0xff] (!%p1510_p1), %v2268_v0 }
 0x103   : > { %594 = vst [vmem:[#allocation4 + $0x50] sm:$0xff] (!%p1510_p1), %v2268_v0  ;;  %595 = vst [vmem:[#allocation4 + $0x58] sm:$0xff] (!%p1510_p1), %v2268_v0 }
 0x104   : > { %596 = vst [vmem:[#allocation4 + $0x60] sm:$0xff] (!%p1510_p1), %v2268_v0  ;;  %597 = vst [vmem:[#allocation4 + $0x68] sm:$0xff] (!%p1510_p1), %v2268_v0 }
 0x105   : > { %598 = vst [vmem:[#allocation4 + $0x70] sm:$0xff] %v2268_v0  ;;  %599 = vst [vmem:[#allocation4 + $0x78] sm:$0xff] %v2268_v0 }
 0x106 PF: > { %s2965_s11 = sld [smem:[#allocation23_spill]]  ;;  %s2966_s26 = sld [smem:[#allocation22_spill]] }
 0x10c   : > { %s1511_s25 = sshll.u32 %s2965_s11, 1 }
 0x10d   : > { %s601_s13 = sadd.s32 %s2966_s26, %s1511_s25 }
 0x10e   : > { %s602_s14 = sld [smem:[#allocation6 + %s601_s13]] }
 0x114   : > { %p1512_p8 = scmp.eq.s32.totalorder %s602_s14, 0 }
 0x115   : > { %s2967_s2 = sld [smem:[#allocation22_spill]] (!%p1512_p8)  ;;  %v1965_v1 = vld [vmem:[%s2636_s10] sm:$0xff] (!%p1512_p8)   ;;  %v1967_v27 = vld [vmem:[%s2636_s10 + $0x8] sm:$0xff] (!%p1512_p8)   ;;  %v1969_v29 = vld [vmem:[%s2636_s10 + $0x10] sm:$0xff] (!%p1512_p8)  }
 0x116   : > { %606 = sbr.rel (%p1512_p8) target bundleno = 546 (0x222), region = 84  ;;  %v1966_v2 = vld [vmem:[%s2636_s10 + $0x20] sm:$0xff] (!%p1512_p8)   ;;  %1641 = vmatprep.mubr.bf16.mxu0 (!%p1512_p8), %v1965_v1  ;;  %v1968_v28 = vld [vmem:[%s2636_s10 + $0x28] sm:$0xff] (!%p1512_p8)   ;;  %v1970_v30 = vld [vmem:[%s2636_s10 + $0x30] sm:$0xff] (!%p1512_p8)  }
 0x117   : > { %1649 = vmatprep.mubr.bf16.mxu1 (!%p1512_p8), %v1966_v2  ;;  %v1971_v31 = vld [vmem:[%s2636_s10 + $0x18] sm:$0xff] (!%p1512_p8)   ;;  %v635_v33 = vld [vmem:[#allocation4 + $0x10] sm:$0xff] (!%p1512_p8)  ;;  %v633_v35 = vld [vmem:[#allocation4] sm:$0xff] (!%p1512_p8) }
 0x118   : > { %v1972_v32 = vld [vmem:[%s2636_s10 + $0x38] sm:$0xff] (!%p1512_p8)   ;;  %v643_v34 = vld [vmem:[#allocation4 + $0x50] sm:$0xff] (!%p1512_p8)  ;;  %v641_v36 = vld [vmem:[#allocation4 + $0x40] sm:$0xff] (!%p1512_p8) }
 0x119   : > { %v636_v39 = vld [vmem:[#allocation4 + $0x18] sm:$0xff] (!%p1512_p8)  ;;  %v634_v45 = vld [vmem:[#allocation4 + $0x8] sm:$0xff] (!%p1512_p8)  ;;  %v639_v57 = vld [vmem:[#allocation4 + $0x30] sm:$0xff] (!%p1512_p8) }
 0x11a   : > { %v644_v40 = vld [vmem:[#allocation4 + $0x58] sm:$0xff] (!%p1512_p8)  ;;  %v642_v46 = vld [vmem:[#allocation4 + $0x48] sm:$0xff] (!%p1512_p8)  ;;  %v647_v58 = vld [vmem:[#allocation4 + $0x70] sm:$0xff] (!%p1512_p8) }
 0x11b   : > { %s1513_s15 = sshll.u32 (!%p1512_p8), %s2967_s2, 7  ;;  %v637_v59 = vld [vmem:[#allocation4 + $0x20] sm:$0xff] (!%p1512_p8)  ;;  %v640_v63 = vld [vmem:[#allocation4 + $0x38] sm:$0xff] (!%p1512_p8) }
 0x11c   : > { %s2683_s17 = scalar_lea.vmem (!%p1512_p8), [#allocation2], %s1513_s15  ;;  %v645_v60 = vld [vmem:[#allocation4 + $0x60] sm:$0xff] (!%p1512_p8)  ;;  %v648_v0 = vld [vmem:[#allocation4 + $0x78] sm:$0xff] (!%p1512_p8) }
 0x11d   : > { %v609_v3 = vld [vmem:[%s2683_s17] sm:$0xff]  ;;  %v610_v4 = vld [vmem:[%s2683_s17 + $0x8] sm:$0xff]  ;;  %v611_v5 = vld [vmem:[%s2683_s17 + $0x10] sm:$0xff] }
 0x11e   : > { %v625_v6 = vpack.c.bf16 %v610_v4, %v609_v3  ;;  %v612_v7 = vld [vmem:[%s2683_s17 + $0x18] sm:$0xff]  ;;  %v613_v9 = vld [vmem:[%s2683_s17 + $0x20] sm:$0xff]  ;;  %v614_v10 = vld [vmem:[%s2683_s17 + $0x28] sm:$0xff] }
 0x11f   : > { %v626_v8 = vpack.c.bf16 %v612_v7, %v611_v5  ;;  %v627_v11 = vpack.c.bf16 %v614_v10, %v613_v9  ;;  %v615_v12 = vld [vmem:[%s2683_s17 + $0x30] sm:$0xff]  ;;  %v616_v13 = vld [vmem:[%s2683_s17 + $0x38] sm:$0xff]  ;;  %v617_v15 = vld [vmem:[%s2683_s17 + $0x40] sm:$0xff] }
 0x120   : > { %1625 = vmatprep.subr.bf16.mxu0 %v625_v6  ;;  %1780 = vmatprep.subr.bf16.mxu1 %v625_v6  ;;  %v628_v14 = vpack.c.bf16 %v616_v13, %v615_v12  ;;  %v618_v16 = vld [vmem:[%s2683_s17 + $0x48] sm:$0xff]  ;;  %v619_v18 = vld [vmem:[%s2683_s17 + $0x50] sm:$0xff]  ;;  %v620_v19 = vld [vmem:[%s2683_s17 + $0x58] sm:$0xff] }
 0x121   : > { %1626 = vmatpush3.bf16.msra.mxu0 %v625_v6  ;;  %1788 = vmatpush3.bf16.msra.mxu1 %v625_v6  ;;  %v629_v17 = vpack.c.bf16 %v618_v16, %v617_v15  ;;  %v630_v20 = vpack.c.bf16 %v620_v19, %v619_v18  ;;  %v621_v21 = vld [vmem:[%s2683_s17 + $0x60] sm:$0xff]  ;;  %v622_v22 = vld [vmem:[%s2683_s17 + $0x68] sm:$0xff]  ;;  %v623_v24 = vld [vmem:[%s2683_s17 + $0x70] sm:$0xff] }
 0x122   : > { %1627 = vmatprep.subr.bf16.mxu0 %v626_v8  ;;  %1781 = vmatprep.subr.bf16.mxu1 %v626_v8  ;;  %v631_v23 = vpack.c.bf16 %v622_v22, %v621_v21  ;;  %v624_v25 = vld [vmem:[%s2683_s17 + $0x78] sm:$0xff]  ;;  %v638_v5 = vld [vmem:[#allocation4 + $0x28] sm:$0xff] }
 0x123   : > { %v632_v26 = vpack.c.bf16 %v624_v25, %v623_v24  ;;  %v646_v6 = vld [vmem:[#allocation4 + $0x68] sm:$0xff] }
 0x125   : > { %1628 = vmatpush3.bf16.msra.mxu0 %v626_v8  ;;  %1789 = vmatpush3.bf16.msra.mxu1 %v626_v8 }
 0x126   : > { %1629 = vmatprep.subr.bf16.mxu0 %v627_v11  ;;  %1782 = vmatprep.subr.bf16.mxu1 %v627_v11 }
 0x129   : > { %1630 = vmatpush3.bf16.msra.mxu0 %v627_v11  ;;  %1790 = vmatpush3.bf16.msra.mxu1 %v627_v11 }
 0x12a   : > { %1631 = vmatprep.subr.bf16.mxu0 %v628_v14  ;;  %1783 = vmatprep.subr.bf16.mxu1 %v628_v14 }
 0x12d   : > { %1632 = vmatpush3.bf16.msra.mxu0 %v628_v14  ;;  %1791 = vmatpush3.bf16.msra.mxu1 %v628_v14 }
 0x12e   : > { %1633 = vmatprep.subr.bf16.mxu0 %v629_v17  ;;  %1784 = vmatprep.subr.bf16.mxu1 %v629_v17 }
 0x131   : > { %1634 = vmatpush3.bf16.msra.mxu0 %v629_v17  ;;  %1792 = vmatpush3.bf16.msra.mxu1 %v629_v17 }
 0x132   : > { %1635 = vmatprep.subr.bf16.mxu0 %v630_v20  ;;  %1785 = vmatprep.subr.bf16.mxu1 %v630_v20 }
 0x135   : > { %1636 = vmatpush3.bf16.msra.mxu0 %v630_v20  ;;  %1793 = vmatpush3.bf16.msra.mxu1 %v630_v20 }
 0x136   : > { %1637 = vmatprep.subr.bf16.mxu0 %v631_v23  ;;  %1786 = vmatprep.subr.bf16.mxu1 %v631_v23 }
 0x139   : > { %1638 = vmatpush3.bf16.msra.mxu0 %v631_v23  ;;  %1794 = vmatpush3.bf16.msra.mxu1 %v631_v23 }
 0x13a   : > { %1639 = vmatprep.subr.bf16.mxu0 %v632_v26  ;;  %1787 = vmatprep.subr.bf16.mxu1 %v632_v26 }
 0x13d   : > { %1640 = vmatpush3.bf16.msra.mxu0 %v632_v26  ;;  %1795 = vmatpush3.bf16.msra.mxu1 %v632_v26 }
 0x140   : > { %1642 = vmatmul.mubr.bf16.vlgmr.msra.gmra.mrb[0].mxu0 %v1967_v27  ;;  %1650 = vmatmul.mubr.bf16.vlgmr.msra.gmra.mrb[0].mxu1 %v1968_v28 }
 0x141   : > { %1645 = vmatprep.mubr.bf16.mxu0 %v1969_v29  ;;  %1653 = vmatprep.mubr.bf16.mxu1 %v1970_v30 }
 0x148   : > { %1646 = vmatmul.mubr.bf16.gmra.mrb[4].mxu0 %v1971_v31  ;;  %1654 = vmatmul.mubr.bf16.gmra.mrb[4].mxu1 %v1972_v32 }
 0x213   : > { %v1643_v37 = vpop.f32.mrb[0].mxu0  ;;  %v1651_v38 = vpop.f32.mrb[0].mxu1 }
 0x214   : > { %v812_v41 = vadd.f32 %v1643_v37, %v635_v33  ;;  %v820_v42 = vadd.f32 %v1651_v38, %v643_v34  ;;  %v747_v43 = vpop.f32.mrb[1].mxu0  ;;  %v779_v44 = vpop.f32.mrb[1].mxu1 }
 0x215   : > { %v810_v47 = vadd.f32 %v747_v43, %v633_v35  ;;  %v818_v48 = vadd.f32 %v779_v44, %v641_v36  ;;  %v1644_v49 = vpop.f32.mrb[2].mxu0  ;;  %v1652_v50 = vpop.f32.mrb[2].mxu1 }
 0x216   : > { %828 = vst [vmem:[#allocation4 + $0x10] sm:$0xff] %v812_v41  ;;  %836 = vst [vmem:[#allocation4 + $0x50] sm:$0xff] %v820_v42  ;;  %v813_v51 = vadd.f32 %v1644_v49, %v636_v39  ;;  %v821_v52 = vadd.f32 %v1652_v50, %v644_v40  ;;  %v750_v53 = vpop.f32.mrb[3].mxu0  ;;  %v782_v54 = vpop.f32.mrb[3].mxu1 }
 0x217   : > { %826 = vst [vmem:[#allocation4] sm:$0xff] %v810_v47  ;;  %834 = vst [vmem:[#allocation4 + $0x40] sm:$0xff] %v818_v48  ;;  %v811_v55 = vadd.f32 %v750_v53, %v634_v45  ;;  %v819_v56 = vadd.f32 %v782_v54, %v642_v46 }
 0x218   : > { %829 = vst [vmem:[#allocation4 + $0x18] sm:$0xff] %v813_v51  ;;  %837 = vst [vmem:[#allocation4 + $0x58] sm:$0xff] %v821_v52 }
 0x219   : > { %827 = vst [vmem:[#allocation4 + $0x8] sm:$0xff] %v811_v55  ;;  %835 = vst [vmem:[#allocation4 + $0x48] sm:$0xff] %v819_v56 }
 0x21b   : > { %v1647_v61 = vpop.f32.mrb[4].mxu0  ;;  %v1655_v62 = vpop.f32.mrb[4].mxu1 }
 0x21c   : > { %v816_v1 = vadd.f32 %v1647_v61, %v639_v57  ;;  %v824_v2 = vadd.f32 %v1655_v62, %v647_v58  ;;  %v763_v3 = vpop.f32.mrb[5].mxu0  ;;  %v795_v4 = vpop.f32.mrb[5].mxu1 }
 0x21d   : > { %v814_v7 = vadd.f32 %v763_v3, %v637_v59  ;;  %v822_v8 = vadd.f32 %v795_v4, %v645_v60  ;;  %v1648_v9 = vpop.f32.mrb[6].mxu0  ;;  %v1656_v10 = vpop.f32.mrb[6].mxu1 }
 0x21e   : > { %832 = vst [vmem:[#allocation4 + $0x30] sm:$0xff] %v816_v1  ;;  %840 = vst [vmem:[#allocation4 + $0x70] sm:$0xff] %v824_v2  ;;  %v817_v11 = vadd.f32 %v1648_v9, %v640_v63  ;;  %v825_v12 = vadd.f32 %v1656_v10, %v648_v0  ;;  %v766_v13 = vpop.f32.mrb[7].mxu0  ;;  %v798_v14 = vpop.f32.mrb[7].mxu1 }
 0x21f   : > { %830 = vst [vmem:[#allocation4 + $0x20] sm:$0xff] %v814_v7  ;;  %838 = vst [vmem:[#allocation4 + $0x60] sm:$0xff] %v822_v8  ;;  %v815_v15 = vadd.f32 %v766_v13, %v638_v5  ;;  %v823_v16 = vadd.f32 %v798_v14, %v646_v6 }
 0x220   : > { %833 = vst [vmem:[#allocation4 + $0x38] sm:$0xff] %v817_v11  ;;  %841 = vst [vmem:[#allocation4 + $0x78] sm:$0xff] %v825_v12 }
 0x221   : > { %831 = vst [vmem:[#allocation4 + $0x28] sm:$0xff] %v815_v15  ;;  %839 = vst [vmem:[#allocation4 + $0x68] sm:$0xff] %v823_v16 }
 0x222 PF: > { %s2968_s10 = sld [smem:[#allocation22_spill]] }
 0x228   : > { %p842_p6 = scmp.eq.s32.totalorder %s2968_s10, 1  ;;  %p1522_p9 = scmp.ne.s32.totalorder %s2968_s10, 1 }
 0x229   : > { %v1973_v17 = vld [vmem:[%s2643_s16] sm:$0xff] (!%p1522_p9)   ;;  %v1974_v18 = vld [vmem:[%s2643_s16 + $0x8] sm:$0xff] (!%p1522_p9)   ;;  %v1975_v19 = vld [vmem:[%s2643_s16 + $0x10] sm:$0xff] (!%p1522_p9)   ;;  %s2969_s6 = sld [smem:[#allocation23_spill]] (!%p1522_p9) }
 0x22a   : > { %845 = sbr.rel (%p1522_p9) target bundleno = 819 (0x333), region = 88  ;;  %1657 = vmatprep.subr.bf16.mxu0 (!%p1522_p9), %v1973_v17  ;;  %1796 = vmatprep.subr.bf16.mxu1 (!%p1522_p9), %v1973_v17  ;;  %v1976_v20 = vld [vmem:[%s2643_s16 + $0x18] sm:$0xff] (!%p1522_p9)   ;;  %v846_v21 = vld [vmem:[#allocation4] sm:$0xff] (!%p1522_p9)  ;;  %v847_v22 = vld [vmem:[#allocation4 + $0x8] sm:$0xff] (!%p1522_p9) }
 0x22b   : > { %1658 = vmatpush3.bf16.msra.mxu0 (!%p1522_p9), %v1973_v17  ;;  %1804 = vmatpush3.bf16.msra.mxu1 (!%p1522_p9), %v1973_v17  ;;  %v854_v23 = vld [vmem:[#allocation4 + $0x40] sm:$0xff] (!%p1522_p9)  ;;  %v862_v24 = vpack.c.bf16 (!%p1522_p9), %v847_v22, %v846_v21  ;;  %v855_v25 = vld [vmem:[#allocation4 + $0x48] sm:$0xff] (!%p1522_p9)  ;;  %v1979_v29 = vld [vmem:[%s2643_s16 + $0x30] sm:$0xff] (!%p1522_p9)  }
 0x22c   : > { %1659 = vmatprep.subr.bf16.mxu0 (!%p1522_p9), %v1974_v18  ;;  %1797 = vmatprep.subr.bf16.mxu1 (!%p1522_p9), %v1974_v18  ;;  %v866_v26 = vpack.c.bf16 (!%p1522_p9), %v855_v25, %v854_v23  ;;  %v1977_v27 = vld [vmem:[%s2643_s16 + $0x20] sm:$0xff] (!%p1522_p9)   ;;  %v1978_v28 = vld [vmem:[%s2643_s16 + $0x28] sm:$0xff] (!%p1522_p9)   ;;  %v1980_v30 = vld [vmem:[%s2643_s16 + $0x38] sm:$0xff] (!%p1522_p9)  }
 0x22d   : > { %1673 = vmatprep.mubr.bf16.mxu0 (!%p1522_p9), %v862_v24  ;;  %v848_v31 = vld [vmem:[#allocation4 + $0x10] sm:$0xff] (!%p1522_p9)  ;;  %v849_v32 = vld [vmem:[#allocation4 + $0x18] sm:$0xff] (!%p1522_p9)  ;;  %v850_v35 = vld [vmem:[#allocation4 + $0x20] sm:$0xff] (!%p1522_p9) }
 0x22e   : > { %1681 = vmatprep.mubr.bf16.mxu1 (!%p1522_p9), %v866_v26  ;;  %v856_v33 = vld [vmem:[#allocation4 + $0x50] sm:$0xff] (!%p1522_p9)  ;;  %v857_v34 = vld [vmem:[#allocation4 + $0x58] sm:$0xff] (!%p1522_p9)  ;;  %v851_v36 = vld [vmem:[#allocation4 + $0x28] sm:$0xff] (!%p1522_p9)  ;;  %v863_v39 = vpack.c.bf16 (!%p1522_p9), %v849_v32, %v848_v31 }
 0x22f   : > { %1660 = vmatpush3.bf16.msra.mxu0 (!%p1522_p9), %v1974_v18  ;;  %1805 = vmatpush3.bf16.msra.mxu1 (!%p1522_p9), %v1974_v18  ;;  %v858_v37 = vld [vmem:[#allocation4 + $0x60] sm:$0xff] (!%p1522_p9)  ;;  %v859_v38 = vld [vmem:[#allocation4 + $0x68] sm:$0xff] (!%p1522_p9)  ;;  %v867_v40 = vpack.c.bf16 (!%p1522_p9), %v857_v34, %v856_v33  ;;  %v864_v41 = vpack.c.bf16 (!%p1522_p9), %v851_v36, %v850_v35  ;;  %v852_v43 = vld [vmem:[#allocation4 + $0x30] sm:$0xff] (!%p1522_p9)  ;;  %s1533_s11 = sshll.u32 (!%p1522_p9), %s2969_s6, 7 }
 0x230   : > { %1661 = vmatprep.subr.bf16.mxu0 (!%p1522_p9), %v1975_v19  ;;  %1798 = vmatprep.subr.bf16.mxu1 (!%p1522_p9), %v1975_v19  ;;  %v868_v42 = vpack.c.bf16 (!%p1522_p9), %v859_v38, %v858_v37  ;;  %v853_v44 = vld [vmem:[#allocation4 + $0x38] sm:$0xff] (!%p1522_p9)  ;;  %v860_v45 = vld [vmem:[#allocation4 + $0x70] sm:$0xff] (!%p1522_p9)  ;;  %v2722_v49 = vld [vmem:[%s432_s9] ss:$0 sm:$0xff] (!%p1522_p9)  ;;  %s2742_s22 = scalar_lea.vmem (!%p1522_p9), [#allocation2], %s1533_s11  ;;  %s2762_s9 = scalar_lea.vmem (!%p1522_p9), [#allocation3], %s1533_s11 }
 0x231   : > { %v861_v46 = vld [vmem:[#allocation4 + $0x78] sm:$0xff]  ;;  %v865_v47 = vpack.c.bf16 %v853_v44, %v852_v43  ;;  %v2730_v51 = vld [vmem:[%s435_s19] ss:$0 sm:$0xff]  ;;  %v1097_v3 = vld [vmem:[%s2742_s22 + $0x10] sm:$0xff] }
 0x232   : > { %v869_v48 = vpack.c.bf16 %v861_v46, %v860_v45  ;;  %v1105_v4 = vld [vmem:[%s2742_s22 + $0x50] sm:$0xff]  ;;  %v1095_v11 = vld [vmem:[%s2742_s22] sm:$0xff]  ;;  %v1098_v17 = vld [vmem:[%s2742_s22 + $0x18] sm:$0xff] }
 0x233   : > { %1662 = vmatpush3.bf16.msra.mxu0 %v1975_v19  ;;  %1806 = vmatpush3.bf16.msra.mxu1 %v1975_v19  ;;  %v1103_v12 = vld [vmem:[%s2742_s22 + $0x40] sm:$0xff]  ;;  %v1106_v18 = vld [vmem:[%s2742_s22 + $0x58] sm:$0xff]  ;;  %v1096_v25 = vld [vmem:[%s2742_s22 + $0x8] sm:$0xff] }
 0x234   : > { %1663 = vmatprep.subr.bf16.mxu0 %v1976_v20  ;;  %1799 = vmatprep.subr.bf16.mxu1 %v1976_v20  ;;  %v1104_v26 = vld [vmem:[%s2742_s22 + $0x48] sm:$0xff] }
 0x237   : > { %1664 = vmatpush3.bf16.msra.mxu0 %v1976_v20  ;;  %1807 = vmatpush3.bf16.msra.mxu1 %v1976_v20 }
 0x238   : > { %1665 = vmatprep.subr.bf16.mxu0 %v1977_v27  ;;  %1800 = vmatprep.subr.bf16.mxu1 %v1977_v27 }
 0x23b   : > { %1666 = vmatpush3.bf16.msra.mxu0 %v1977_v27  ;;  %1808 = vmatpush3.bf16.msra.mxu1 %v1977_v27 }
 0x23c   : > { %1667 = vmatprep.subr.bf16.mxu0 %v1978_v28  ;;  %1801 = vmatprep.subr.bf16.mxu1 %v1978_v28 }
 0x23f   : > { %1668 = vmatpush3.bf16.msra.mxu0 %v1978_v28  ;;  %1809 = vmatpush3.bf16.msra.mxu1 %v1978_v28 }
 0x240   : > { %1669 = vmatprep.subr.bf16.mxu0 %v1979_v29  ;;  %1802 = vmatprep.subr.bf16.mxu1 %v1979_v29 }
 0x243   : > { %1670 = vmatpush3.bf16.msra.mxu0 %v1979_v29  ;;  %1810 = vmatpush3.bf16.msra.mxu1 %v1979_v29 }
 0x244   : > { %1671 = vmatprep.subr.bf16.mxu0 %v1980_v30  ;;  %1803 = vmatprep.subr.bf16.mxu1 %v1980_v30 }
 0x247   : > { %1672 = vmatpush3.bf16.msra.mxu0 %v1980_v30  ;;  %1811 = vmatpush3.bf16.msra.mxu1 %v1980_v30 }
 0x24a   : > { %1674 = vmatmul.mubr.bf16.vlgmr.msra.gmra.mrb[0].mxu0 %v863_v39  ;;  %1682 = vmatmul.mubr.bf16.vlgmr.msra.gmra.mrb[0].mxu1 %v867_v40 }
 0x24b   : > { %1677 = vmatprep.mubr.bf16.mxu0 %v864_v41  ;;  %1685 = vmatprep.mubr.bf16.mxu1 %v868_v42 }
 0x252   : > { %1678 = vmatmul.mubr.bf16.gmra.mrb[4].mxu0 %v865_v47  ;;  %1686 = vmatmul.mubr.bf16.gmra.mrb[4].mxu1 %v869_v48 }
 0x31d   : > { %v1675_v50 = vpop.f32.mrb[0].mxu0  ;;  %v1683_v52 = vpop.f32.mrb[0].mxu1 }
 0x31e   : > { %v1040_v53 = vmul.f32 %v1675_v50, %v2722_v49  ;;  %v1048_v54 = vmul.f32 %v1683_v52, %v2722_v49  ;;  %v968_v55 = vpop.f32.mrb[1].mxu0  ;;  %v1000_v56 = vpop.f32.mrb[1].mxu1 }
 0x31f   : > { %v1038_v57 = vmul.f32 %v2722_v49, %v968_v55  ;;  %v1046_v58 = vmul.f32 %v2722_v49, %v1000_v56  ;;  %v1676_v59 = vpop.f32.mrb[2].mxu0  ;;  %v1684_v60 = vpop.f32.mrb[2].mxu1 }
 0x320   : > { %v1063_v61 = vadd.f32 %v2730_v51, %v1040_v53  ;;  %v1071_v62 = vadd.f32 %v2730_v51, %v1048_v54  ;;  %v1041_v63 = vmul.f32 %v1676_v59, %v2722_v49  ;;  %v1049_v0 = vmul.f32 %v1684_v60, %v2722_v49  ;;  %v971_v1 = vpop.f32.mrb[3].mxu0  ;;  %v1003_v2 = vpop.f32.mrb[3].mxu1  ;;  %v1101_v53 = vld [vmem:[%s2742_s22 + $0x30] sm:$0xff] }
 0x321   : > { %v1061_v5 = vadd.f32 %v2730_v51, %v1038_v57  ;;  %v1069_v6 = vadd.f32 %v2730_v51, %v1046_v58  ;;  %v1039_v7 = vmul.f32 %v2722_v49, %v971_v1  ;;  %v1047_v8 = vmul.f32 %v2722_v49, %v1003_v2  ;;  %v1109_v54 = vld [vmem:[%s2742_s22 + $0x70] sm:$0xff] }
 0x322   : > { %v1079_v9 = vmax.f32 %v1063_v61, 0.0  ;;  %v1087_v10 = vmax.f32 %v1071_v62, 0.0  ;;  %v1064_v13 = vadd.f32 %v2730_v51, %v1041_v63  ;;  %v1072_v14 = vadd.f32 %v2730_v51, %v1049_v0  ;;  %v1099_v61 = vld [vmem:[%s2742_s22 + $0x20] sm:$0xff] }
 0x323   : > { %v1077_v15 = vmax.f32 %v1061_v5, 0.0  ;;  %v1085_v16 = vmax.f32 %v1069_v6, 0.0  ;;  %v1062_v19 = vadd.f32 %v2730_v51, %v1039_v7  ;;  %v1070_v20 = vadd.f32 %v2730_v51, %v1047_v8  ;;  %v1107_v62 = vld [vmem:[%s2742_s22 + $0x60] sm:$0xff] }
 0x324   : > { %v1113_v21 = vadd.f32 %v1097_v3, %v1079_v9  ;;  %v1121_v22 = vadd.f32 %v1105_v4, %v1087_v10  ;;  %v1080_v23 = vmax.f32 %v1064_v13, 0.0  ;;  %v1088_v24 = vmax.f32 %v1072_v14, 0.0  ;;  %v1102_v3 = vld [vmem:[%s2742_s22 + $0x38] sm:$0xff]  ;;  %v1100_v10 = vld [vmem:[%s2742_s22 + $0x28] sm:$0xff] }
 0x325   : > { %v1111_v27 = vadd.f32 %v1095_v11, %v1077_v15  ;;  %v1119_v28 = vadd.f32 %v1103_v12, %v1085_v16  ;;  %v1078_v29 = vmax.f32 %v1062_v19, 0.0  ;;  %v1086_v30 = vmax.f32 %v1070_v20, 0.0  ;;  %v1679_v31 = vpop.f32.mrb[4].mxu0  ;;  %v1687_v32 = vpop.f32.mrb[4].mxu1  ;;  %v1110_v4 = vld [vmem:[%s2742_s22 + $0x78] sm:$0xff]  ;;  %v1108_v11 = vld [vmem:[%s2742_s22 + $0x68] sm:$0xff] }
 0x326   : > { %1130 = vst [vmem:[%s2762_s9 + $0x10] sm:$0xff] %v1113_v21  ;;  %1138 = vst [vmem:[%s2762_s9 + $0x50] sm:$0xff] %v1121_v22  ;;  %v1114_v33 = vadd.f32 %v1098_v17, %v1080_v23  ;;  %v1122_v34 = vadd.f32 %v1106_v18, %v1088_v24  ;;  %v1044_v35 = vmul.f32 %v1679_v31, %v2722_v49  ;;  %v984_v37 = vpop.f32.mrb[5].mxu0  ;;  %v1016_v38 = vpop.f32.mrb[5].mxu1 }
 0x327   : > { %v1052_v36 = vmul.f32 %v1687_v32, %v2722_v49  ;;  %1128 = vst [vmem:[%s2762_s9] sm:$0xff] %v1111_v27  ;;  %1136 = vst [vmem:[%s2762_s9 + $0x40] sm:$0xff] %v1119_v28  ;;  %v1112_v39 = vadd.f32 %v1096_v25, %v1078_v29  ;;  %v1120_v40 = vadd.f32 %v1104_v26, %v1086_v30  ;;  %v1680_v43 = vpop.f32.mrb[6].mxu0  ;;  %v1688_v44 = vpop.f32.mrb[6].mxu1 }
 0x328   : > { %v1042_v41 = vmul.f32 %v2722_v49, %v984_v37  ;;  %v1050_v42 = vmul.f32 %v2722_v49, %v1016_v38  ;;  %1131 = vst [vmem:[%s2762_s9 + $0x18] sm:$0xff] %v1114_v33  ;;  %1139 = vst [vmem:[%s2762_s9 + $0x58] sm:$0xff] %v1122_v34  ;;  %v1067_v45 = vadd.f32 %v2730_v51, %v1044_v35  ;;  %v987_v50 = vpop.f32.mrb[7].mxu0  ;;  %v1019_v52 = vpop.f32.mrb[7].mxu1 }
 0x329   : > { %v1075_v46 = vadd.f32 %v2730_v51, %v1052_v36  ;;  %v1045_v47 = vmul.f32 %v1680_v43, %v2722_v49  ;;  %v1053_v48 = vmul.f32 %v1688_v44, %v2722_v49  ;;  %1129 = vst [vmem:[%s2762_s9 + $0x8] sm:$0xff] %v1112_v39  ;;  %1137 = vst [vmem:[%s2762_s9 + $0x48] sm:$0xff] %v1120_v40 }
 0x32a   : > { %v1065_v55 = vadd.f32 %v2730_v51, %v1042_v41  ;;  %v1073_v56 = vadd.f32 %v2730_v51, %v1050_v42  ;;  %v1043_v57 = vmul.f32 %v2722_v49, %v987_v50  ;;  %v1051_v58 = vmul.f32 %v2722_v49, %v1019_v52 }
 0x32b   : > { %v1083_v59 = vmax.f32 %v1067_v45, 0.0  ;;  %v1091_v60 = vmax.f32 %v1075_v46, 0.0  ;;  %v1068_v63 = vadd.f32 %v2730_v51, %v1045_v47  ;;  %v1076_v0 = vadd.f32 %v2730_v51, %v1053_v48 }
 0x32c   : > { %v1081_v1 = vmax.f32 %v1065_v55, 0.0  ;;  %v1089_v2 = vmax.f32 %v1073_v56, 0.0  ;;  %v1066_v5 = vadd.f32 %v2730_v51, %v1043_v57  ;;  %v1074_v49 = vadd.f32 %v2730_v51, %v1051_v58 }
 0x32d   : > { %v1117_v6 = vadd.f32 %v1101_v53, %v1083_v59  ;;  %v1125_v7 = vadd.f32 %v1109_v54, %v1091_v60  ;;  %v1084_v8 = vmax.f32 %v1068_v63, 0.0  ;;  %v1092_v9 = vmax.f32 %v1076_v0, 0.0 }
 0x32e   : > { %v1115_v12 = vadd.f32 %v1099_v61, %v1081_v1  ;;  %v1123_v13 = vadd.f32 %v1107_v62, %v1089_v2  ;;  %v1082_v14 = vmax.f32 %v1066_v5, 0.0  ;;  %v1090_v15 = vmax.f32 %v1074_v49, 0.0 }
 0x32f   : > { %1134 = vst [vmem:[%s2762_s9 + $0x30] sm:$0xff] %v1117_v6  ;;  %1142 = vst [vmem:[%s2762_s9 + $0x70] sm:$0xff] %v1125_v7  ;;  %v1118_v16 = vadd.f32 %v1102_v3, %v1084_v8  ;;  %v1126_v17 = vadd.f32 %v1110_v4, %v1092_v9 }
 0x330   : > { %1132 = vst [vmem:[%s2762_s9 + $0x20] sm:$0xff] %v1115_v12  ;;  %1140 = vst [vmem:[%s2762_s9 + $0x60] sm:$0xff] %v1123_v13  ;;  %v1116_v51 = vadd.f32 %v1100_v10, %v1082_v14  ;;  %v1124_v18 = vadd.f32 %v1108_v11, %v1090_v15 }
 0x331   : > { %1135 = vst [vmem:[%s2762_s9 + $0x38] sm:$0xff] %v1118_v16  ;;  %1143 = vst [vmem:[%s2762_s9 + $0x78] sm:$0xff] %v1126_v17 }
 0x332   : > { %1133 = vst [vmem:[%s2762_s9 + $0x28] sm:$0xff] %v1116_v51  ;;  %1141 = vst [vmem:[%s2762_s9 + $0x68] sm:$0xff] %v1124_v18 }
 0x333 PF: > { %s2972_s19 = sld [smem:[#allocation24_spill]]  ;;  %s2973_s14 = sld [smem:[#allocation23_spill]] }
 0x339   : > { %p1144_p13 = scmp.eq.s32.totalorder %s2972_s19, 2  ;;  %p1145_p10 = scmp.eq.s32.totalorder %s2973_s14, 1 }
 0x33b   : > { %p1146_p3 = pnand %p1145_p10, %p1144_p13 }
 0x33d   : > { %p1147_p12 = pneg %p1146_p3 }
 0x33f   : > { %p1148_p4 = pnand %p1147_p12, %p842_p6 }
 0x340   : > { %v1170_v19 = vld [vmem:[#allocation3 + $0x80] sm:$0xff] (!%p1148_p4)  ;;  %v1171_v20 = vld [vmem:[#allocation3 + $0x88] sm:$0xff] (!%p1148_p4)  ;;  %v1172_v24 = vld [vmem:[#allocation3 + $0x90] sm:$0xff] (!%p1148_p4)  ;;  %v2269_v26 = vmov (!%p1148_p4), 0.0|0.0   ;;  %s2975_s10 = sld [smem:[#allocation31_spill]] (!%p1148_p4)  ;;  %vm2270_vm0 = vmmov (!%p1148_p4), 0  }
 0x341   : > { %1151 = sbr.rel (%p1148_p4) target bundleno = 1297 (0x511), region = 92  ;;  %v1154_v21 = vld [vmem:[#allocation3] sm:$0xff] (!%p1148_p4)  ;;  %v1724_v22 = vpack.c.bf16 (!%p1148_p4), %v1171_v20, %v1170_v19  ;;  %v1155_v23 = vld [vmem:[#allocation3 + $0x8] sm:$0xff] (!%p1148_p4)  ;;  %v1173_v25 = vld [vmem:[#allocation3 + $0x98] sm:$0xff] (!%p1148_p4)  ;;  %1756 = vmatprep.subr.bf16.mxu1 (!%p1148_p4), %v2269_v26  ;;  %s2976_s11 = sld [smem:[#allocation32_spill]] (!%p1148_p4) }
 0x342   : > { %v1726_v27 = vpack.c.bf16 (!%p1148_p4), %v1155_v23, %v1154_v21  ;;  %v1728_v28 = vpack.c.bf16 (!%p1148_p4), %v1173_v25, %v1172_v24  ;;  %v1156_v29 = vld [vmem:[#allocation3 + $0x10] sm:$0xff] (!%p1148_p4)  ;;  %v1157_v30 = vld [vmem:[#allocation3 + $0x18] sm:$0xff] (!%p1148_p4)  ;;  %v1174_v31 = vld [vmem:[#allocation3 + $0xa0] sm:$0xff] (!%p1148_p4) }
 0x343   : > { %1725 = vmatprep.subr.bf16.mxu0 (!%p1148_p4), %v1724_v22  ;;  %v1175_v32 = vld [vmem:[#allocation3 + $0xa8] sm:$0xff] (!%p1148_p4)  ;;  %v1730_v33 = vpack.c.bf16 (!%p1148_p4), %v1157_v30, %v1156_v29  ;;  %v1158_v35 = vld [vmem:[#allocation3 + $0x20] sm:$0xff] (!%p1148_p4)  ;;  %v1176_v37 = vld [vmem:[#allocation3 + $0xb0] sm:$0xff] (!%p1148_p4) }
 0x344   : > { %1727 = vmatpush3.bf16.msra.mxu0 (!%p1148_p4), %v1726_v27  ;;  %v1732_v34 = vpack.c.bf16 (!%p1148_p4), %v1175_v32, %v1174_v31  ;;  %v1159_v36 = vld [vmem:[#allocation3 + $0x28] sm:$0xff] (!%p1148_p4)  ;;  %v1177_v38 = vld [vmem:[#allocation3 + $0xb8] sm:$0xff] (!%p1148_p4)  ;;  %v1160_v41 = vld [vmem:[#allocation3 + $0x30] sm:$0xff] (!%p1148_p4)  ;;  %v2271_v31 = vmov (!%p1148_p4), 0.0  }
 0x345   : > { %1729 = vmatprep.subr.bf16.mxu0 (!%p1148_p4), %v1728_v28  ;;  %v1734_v39 = vpack.c.bf16 (!%p1148_p4), %v1159_v36, %v1158_v35  ;;  %v1736_v40 = vpack.c.bf16 (!%p1148_p4), %v1177_v38, %v1176_v37  ;;  %v1161_v42 = vld [vmem:[#allocation3 + $0x38] sm:$0xff] (!%p1148_p4)  ;;  %v1178_v43 = vld [vmem:[#allocation3 + $0xc0] sm:$0xff] (!%p1148_p4)  ;;  %v1179_v44 = vld [vmem:[#allocation3 + $0xc8] sm:$0xff] (!%p1148_p4)  ;;  %1721 = vmatprep.mubr.msk.f32.mxu1 (!%p1148_p4), %vm2270_vm0, %v2271_v31 }
 0x346   : > { %v1153_v45 = vld [vmem:[%s2975_s10 + $0x8] sm:$0xff] (!%p1148_p4)  ;;  %v1256_v46 = vld [vmem:[#allocation13] sm:$0xff] (!%p1148_p4)  ;;  %v1738_v48 = vpack.c.bf16 (!%p1148_p4), %v1161_v42, %v1160_v41  ;;  %v1258_v52 = vld [vmem:[#allocation13 + $0x10] sm:$0xff] (!%p1148_p4)  ;;  %v1740_v54 = vpack.c.bf16 (!%p1148_p4), %v1179_v44, %v1178_v43 }
 0x347   : > { %1250 = vmatprep.mubr.f32.mxu0 (!%p1148_p4), %v1153_v45  ;;  %v1257_v47 = vld [vmem:[#allocation13 + $0x8] sm:$0xff] (!%p1148_p4)  ;;  %v1259_v53 = vld [vmem:[#allocation13 + $0x18] sm:$0xff] (!%p1148_p4)  ;;  %v1162_v55 = vld [vmem:[#allocation3 + $0x40] sm:$0xff] (!%p1148_p4) }
 0x348   : > { %1731 = vmatpush3.bf16.msra.mxu0 %v1730_v33  ;;  %v1757_v50 = vpack.c.bf16 %v1257_v47, %v1256_v46  ;;  %v1163_v56 = vld [vmem:[#allocation3 + $0x48] sm:$0xff]  ;;  %v1180_v57 = vld [vmem:[#allocation3 + $0xd0] sm:$0xff]  ;;  %v1181_v58 = vld [vmem:[#allocation3 + $0xd8] sm:$0xff]  ;;  %v1760_v59 = vpack.c.bf16 %v1259_v53, %v1258_v52 }
 0x349   : > { %1733 = vmatprep.subr.bf16.mxu0 %v1732_v34  ;;  %v1260_v60 = vld [vmem:[#allocation13 + $0x20] sm:$0xff]  ;;  %v1261_v61 = vld [vmem:[#allocation13 + $0x28] sm:$0xff]  ;;  %v1742_v62 = vpack.c.bf16 %v1163_v56, %v1162_v55  ;;  %v1744_v63 = vpack.c.bf16 %v1181_v58, %v1180_v57  ;;  %v1164_v0 = vld [vmem:[#allocation3 + $0x50] sm:$0xff] }
 0x34a   : > { %1758 = vmatpush3.bf16.msra.mxu1 %v1757_v50  ;;  %v1165_v1 = vld [vmem:[#allocation3 + $0x58] sm:$0xff]  ;;  %v1182_v2 = vld [vmem:[#allocation3 + $0xe0] sm:$0xff]  ;;  %v1183_v3 = vld [vmem:[#allocation3 + $0xe8] sm:$0xff]  ;;  %v1763_v4 = vpack.c.bf16 %v1261_v61, %v1260_v60 }
 0x34b   : > { %1759 = vmatprep.subr.bf16.mxu1 %v2269_v26  ;;  %v1262_v5 = vld [vmem:[#allocation13 + $0x30] sm:$0xff]  ;;  %v1263_v49 = vld [vmem:[#allocation13 + $0x38] sm:$0xff]  ;;  %v1746_v6 = vpack.c.bf16 %v1165_v1, %v1164_v0  ;;  %v1748_v7 = vpack.c.bf16 %v1183_v3, %v1182_v2  ;;  %v1166_v8 = vld [vmem:[#allocation3 + $0x60] sm:$0xff] }
 0x34c   : > { %1735 = vmatpush3.bf16.msra.mxu0 %v1734_v39  ;;  %v1167_v9 = vld [vmem:[#allocation3 + $0x68] sm:$0xff]  ;;  %v1184_v10 = vld [vmem:[#allocation3 + $0xf0] sm:$0xff]  ;;  %v1185_v11 = vld [vmem:[#allocation3 + $0xf8] sm:$0xff]  ;;  %v1766_v12 = vpack.c.bf16 %v1263_v49, %v1262_v5 }
 0x34d   : > { %1737 = vmatprep.subr.bf16.mxu0 %v1736_v40  ;;  %v1264_v13 = vld [vmem:[#allocation13 + $0x40] sm:$0xff]  ;;  %v1265_v14 = vld [vmem:[#allocation13 + $0x48] sm:$0xff]  ;;  %v1750_v15 = vpack.c.bf16 %v1167_v9, %v1166_v8  ;;  %v1752_v16 = vpack.c.bf16 %v1185_v11, %v1184_v10  ;;  %v1168_v17 = vld [vmem:[#allocation3 + $0x70] sm:$0xff] }
 0x34e   : > { %1761 = vmatpush3.bf16.msra.mxu1 %v1760_v59  ;;  %v1169_v51 = vld [vmem:[#allocation3 + $0x78] sm:$0xff]  ;;  %v1769_v18 = vpack.c.bf16 %v1265_v14, %v1264_v13  ;;  %v1266_v19 = vld [vmem:[#allocation13 + $0x50] sm:$0xff]  ;;  %v1268_v23 = vld [vmem:[#allocation13 + $0x60] sm:$0xff] }
 0x34f   : > { %1762 = vmatprep.subr.bf16.mxu1 %v2269_v26  ;;  %v1267_v20 = vld [vmem:[#allocation13 + $0x58] sm:$0xff]  ;;  %v1754_v21 = vpack.c.bf16 %v1169_v51, %v1168_v17  ;;  %v1269_v24 = vld [vmem:[#allocation13 + $0x68] sm:$0xff]  ;;  %v1152_v25 = vld [vmem:[%s2975_s10] sm:$0xff] }
 0x350   : > { %1739 = vmatpush3.bf16.msra.mxu0 %v1738_v48  ;;  %v1772_v22 = vpack.c.bf16 %v1267_v20, %v1266_v19  ;;  %v1775_v27 = vpack.c.bf16 %v1269_v24, %v1268_v23  ;;  %v1270_v28 = vld [vmem:[#allocation13 + $0x70] sm:$0xff]  ;;  %v1271_v29 = vld [vmem:[#allocation13 + $0x78] sm:$0xff]  ;;  %v1534_v35 = vld [vmem:[%s2976_s11] ss:$0 sm:$0xff] }
 0x351   : > { %1741 = vmatprep.subr.bf16.mxu0 %v1740_v54  ;;  %v1778_v30 = vpack.c.bf16 %v1271_v29, %v1270_v28 }
 0x352   : > { %1764 = vmatpush3.bf16.msra.mxu1 %v1763_v4 }
 0x353   : > { %1765 = vmatprep.subr.bf16.mxu1 %v2269_v26 }
 0x354   : > { %1743 = vmatpush3.bf16.msra.mxu0 %v1742_v62 }
 0x355   : > { %1745 = vmatprep.subr.bf16.mxu0 %v1744_v63 }
 0x356   : > { %1767 = vmatpush3.bf16.msra.mxu1 %v1766_v12 }
 0x357   : > { %1768 = vmatprep.subr.bf16.mxu1 %v2269_v26 }
 0x358   : > { %1747 = vmatpush3.bf16.msra.mxu0 %v1746_v6 }
 0x359   : > { %1749 = vmatprep.subr.bf16.mxu0 %v1748_v7 }
 0x35a   : > { %1770 = vmatpush3.bf16.msra.mxu1 %v1769_v18 }
 0x35b   : > { %1771 = vmatprep.subr.bf16.mxu1 %v2269_v26 }
 0x35c   : > { %1751 = vmatpush3.bf16.msra.mxu0 %v1750_v15 }
 0x35d   : > { %1753 = vmatprep.subr.bf16.mxu0 %v1752_v16 }
 0x35e   : > { %1773 = vmatpush3.bf16.msra.mxu1 %v1772_v22 }
 0x35f   : > { %1774 = vmatprep.subr.bf16.mxu1 %v2269_v26 }
 0x360   : > { %1755 = vmatpush3.bf16.msra.mxu0 %v1754_v21 }
 0x362   : > { %1776 = vmatpush3.bf16.msra.mxu1 %v1775_v27 }
 0x363   : > { %1251 = vmatmul.mubr.f32.vlgmr.msra.gmra.mrb[0].mxu0 %v1152_v25  ;;  %1777 = vmatprep.subr.bf16.mxu1 %v2269_v26 }
 0x366   : > { %1779 = vmatpush3.bf16.msra.mxu1 %v1778_v30 }
 0x436   : > { %v1605_v32 = vpop.f32.mrb[0].mxu0 }
 0x437   : > { %v1606_v33 = vpop.f32.mrb[1].mxu0 }
 0x438   : > { %v1607_v34 = vadd.f32 %v1606_v33, %v1605_v32 }
 0x43a   : > { %1722 = vmatmul.mubr.f32.vlgmr.msra.gmra.mrb[0].mxu1 %v1607_v34 }
 0x50d   : > { %v1345_v36 = vpop.f32.mrb[0].mxu1 }
 0x50e   : > { %v1346_v37 = vadd.f32 %v1534_v35, %v1345_v36  ;;  %v1723_v38 = vpop.f32.mrb[1].mxu1 }
 0x510   : > { %1349 = vst [vmem:[#allocation15] sm:$0xff] %v1346_v37 }
 0x511 PF: > { %p1847_p11 = scmp.eq.s32.totalorder %s2482_s0, 11  ;;  %s2272_s26 = smov [#allocation15]  }
 0x512   : > { %s1357_s25 = sshll.u32 %s2272_s26, 4  ;;  %s1358_s25 = int_to_ptr.vmem [resolvable:$true] %s1357_s25 }
 0x513   : > { %s2107_s13 = scalar_lea.vmem %s1358_s25, 128  ;;  %p2114_p7 = scmp.lt.s32.totalorder %s1358_s25, %s1358_s25 }
 0x514   : > { %p2108_p5 = scmp.ne.s32.totalorder %s1358_s25, %s2107_s13  ;;  %p2115_p1 = scmp.lt.s32.totalorder %s2107_s13, %s2107_s13 }
 0x516   : > { %p2109_p0 = pnand %p2108_p5, %p1847_p11  ;;  %p2116_p8 = por %p2115_p1, %p2114_p7 }
 0x518   : > { %p2110_p2 = pneg %p2109_p0 }
 0x51a   : > { %p2117_p6 = pnand %p2116_p8, %p2110_p2 }
 0x51c   : > { %2120 = shalt.err (!%p2117_p6)
}
 0x51d   : > { %s2977_s19 = sld [smem:[#allocation33_spill]] }
 0x523   : > { %s2978_s14 = smov %s2977_s19  ;;  %s2121_s2 = scalar_lea.hbm %s2977_s19, 128 }
 0x524   : > { %p2122_p9 = scmp.ne.s32.totalorder %s2978_s14, %s2121_s2  ;;  %p2127_p3 = scmp.lt.u32.totalorder %s2121_s2, %s2978_s14 }
 0x526   : > { %p2123_p13 = pnand %p2122_p9, %p1847_p11 }
 0x528   : > { %p2124_p10 = pneg %p2123_p13 }
 0x52a   : > { %p2129_p12 = pnand %p2127_p3, %p2124_p10 }
 0x52c   : > { %2132 = shalt.err (!%p2129_p12)
}
 0x52d   : > { %1825 = dma.vmem_to_hbm [thread:$0]  (%p1847_p11), %s1358_s25, 128, %s2978_s14, [#allocation9]  }
 0x52e   : > { %2204 = dma.done.wait (%p1847_p11), [#allocation9], 128  }
 0x52f   : > { %2206 = vsyncadd (%p1847_p11), [#allocation9], 4294967168 }
 0x530 PF: > { %s29_s30 = sadd.s32 1, %s2257_s30   ;;  %s2980_s13 = sld [smem:[#allocation25_spill]] }
 0x531   : > { %p2849_p4 = scmp.ge.s32.totalorder %s29_s30, 14   ;;  %s2981_s9 = sld [smem:[#allocation26_spill]] }
 0x532   : > { %s2982_s19 = smov %s2213_s20  ;;  %s2983_s20 = smov %s2217_s21 }
 0x533   : > { %s2984_s21 = smov %s2597_s8  ;;  %s2985_s22 = smov %s2225_s23 }
 0x534   : > { %s2986_s23 = smov %s2229_s24  ;;  %s2987_s24 = smov %s2432_s4 }
 0x535   : > { %s2988_s0 = smov %s2245_s27  ;;  %s2989_s25 = smov %s2249_s28 }
 0x536   : > { %s2990_s26 = smov %s2253_s29  ;;  %s2991_s27 = smov %s2980_s13 }
 0x537   : > { %s2992_s28 = smov %s2981_s9  ;;  %s2993_s29 = smov %s3001_s18 }
 0x538   :  { %28 = sbr.rel (!%p2849_p4) target bundleno = 25 (0x19), region = 142 }
 0x53f   :  { %1370 = vsyncpa [#allocation8], 1 }
 0x540   :  { %1372 = vsyncpa [#allocation8 + $0x1], 1 }
 0x541   :  { %1373 = vsyncpa [#allocation11], 1 }
 0x542   :  { %1375 = vsyncpa [#allocation11 + $0x1], 1 }
 0x543   :  { %1376 = vsyncpa [#allocation14], 1 }
 0x544   :  { %1377 = vsyncpa [#allocation9], 1 }
 0x545   :  { %1379 = vsyncpa [#allocation9 + $0x1], 1 }

</bundles_post_ra>
